<compile_context>
chip_gen: v7x
topology: tpu7x:2x2x1
jax: 0.10.0
libtpu: 0.0.40
codegen_flags: <defaults>
</compile_context>

<pallas_src>
import jax
import jax.numpy as jnp
from jax.experimental import pallas as pl
from jax.experimental.pallas import tpu as pltpu


def mlp_kernel(x_ref, w1_ref, b1_ref, w2_ref, b2_ref, out_ref, acc_ref):
    """Grid axis 0 tiles the fc1 reduction (D_in). acc_ref: [B, H] f32."""
    k = pl.program_id(0)

    @pl.when(k == 0)
    def _init():
        acc_ref[...] = jnp.zeros_like(acc_ref)

    # fc1 partial product: [B, tk](bf16) @ [tk, H](bf16) -> f32 accumulate.
    acc_ref[...] += jnp.dot(
        x_ref[...], w1_ref[...], preferred_element_type=jnp.float32
    )

    @pl.when(k == pl.num_programs(0) - 1)
    def _finalize():
        # Bias + ReLU in f32, once, in the epilogue.
        h = jnp.maximum(acc_ref[...] + b1_ref[...], 0.0)
        # Dropout: identity in eval mode.
        # fc2: [B, H](bf16) @ [H, 128](bf16, zero-padded) -> f32, lane-dense store.
        o = jnp.dot(
            h.astype(jnp.bfloat16), w2_ref[...], preferred_element_type=jnp.float32
        )
        out_ref[...] = (o + b2_ref[...]).astype(out_ref.dtype)


def mlp_classifier(x, w1, b1, w2, b2, *, tk=256):
    """x: [B, D_in] f32; w1: [D_in, H]; b1: [1, H]; w2: [H, L]; b2: [1, L].

    Weights are stored pre-transposed relative to torch.nn.Linear so the
    kernel computes x @ W1 + b1 -> ReLU -> (dropout=identity) -> @ W2 + b2.
    """
    B, D_in = x.shape
    H = w1.shape[1]
    L = w2.shape[1]
    assert D_in % tk == 0, (D_in, tk)
    nk = D_in // tk

    # Lane-dense padded output width (multiple of 128).
    L_pad = max(128, pl.cdiv(L, 128) * 128)

    # bf16 weights/activations: halves HBM traffic (the kernel is HBM-bound on
    # W1 at small batch).  Accumulation stays f32 inside the kernel.
    x_bf = x.astype(jnp.bfloat16)
    w1_bf = w1.astype(jnp.bfloat16)
    w2_p = jnp.zeros((H, L_pad), jnp.bfloat16).at[:, :L].set(w2.astype(jnp.bfloat16))
    b2_p = jnp.zeros((1, L_pad), jnp.float32).at[:, :L].set(b2.astype(jnp.float32))
    b1_f = b1.astype(jnp.float32)

    out_padded = pl.pallas_call(
        mlp_kernel,
        out_shape=jax.ShapeDtypeStruct((B, L_pad), jnp.float32),
        grid_spec=pltpu.PrefetchScalarGridSpec(
            num_scalar_prefetch=0,
            grid=(nk,),  # reduction over D_in
            in_specs=[
                pl.BlockSpec((B, tk), lambda k: (0, k)),      # x chunk
                pl.BlockSpec((tk, H), lambda k: (k, 0)),      # W1 chunk
                pl.BlockSpec((1, H), lambda k: (0, 0)),       # b1 (resident)
                pl.BlockSpec((H, L_pad), lambda k: (0, 0)),   # W2 (resident)
                pl.BlockSpec((1, L_pad), lambda k: (0, 0)),   # b2 (resident)
            ],
            out_specs=pl.BlockSpec((B, L_pad), lambda k: (0, 0)),
            scratch_shapes=[pltpu.VMEM((B, H), jnp.float32)],
        ),
        compiler_params=pltpu.CompilerParams(
            dimension_semantics=("arbitrary",),  # K is a reduction axis
            vmem_limit_bytes=16 << 20,
        ),
    )(x_bf, w1_bf, b1_f, w2_p, b2_p)

    return out_padded[:, :L]


def reference_matched(x, w1, b1, w2, b2):
    """Reference matching the kernel's bf16-weight / f32-accumulate precision."""
    xb = x.astype(jnp.bfloat16).astype(jnp.float32)
    w1b = w1.astype(jnp.bfloat16).astype(jnp.float32)
    w2b = w2.astype(jnp.bfloat16).astype(jnp.float32)
    h = jnp.maximum(xb @ w1b + b1, 0.0)
    hb = h.astype(jnp.bfloat16).astype(jnp.float32)
    return hb @ w2b + b2


def reference_f32(x, w1, b1, w2, b2):
    h = jnp.maximum(x @ w1 + b1, 0.0)
    return h @ w2 + b2


if __name__ == "__main__":
    # Shapes implied by the module defaults: input_size=768, hidden_size=1024,
    # num_labels=5, small batch.
    B, D_IN, HIDDEN, NUM_LABELS = 8, 768, 1024, 5

    key = jax.random.PRNGKey(0)
    kx, kw1, kb1, kw2, kb2 = jax.random.split(key, 5)

    x = jax.random.normal(kx, (B, D_IN), dtype=jnp.float32)
    # Deterministic synthetic parameters (torch.nn.Linear-like scale).
    w1 = jax.random.uniform(kw1, (D_IN, HIDDEN), jnp.float32,
                            -1.0 / jnp.sqrt(D_IN), 1.0 / jnp.sqrt(D_IN))
    b1 = jax.random.uniform(kb1, (1, HIDDEN), jnp.float32,
                            -1.0 / jnp.sqrt(D_IN), 1.0 / jnp.sqrt(D_IN))
    w2 = jax.random.uniform(kw2, (HIDDEN, NUM_LABELS), jnp.float32,
                            -1.0 / jnp.sqrt(HIDDEN), 1.0 / jnp.sqrt(HIDDEN))
    b2 = jax.random.uniform(kb2, (1, NUM_LABELS), jnp.float32,
                            -1.0 / jnp.sqrt(HIDDEN), 1.0 / jnp.sqrt(HIDDEN))

    out = mlp_classifier(x, w1, b1, w2, b2)
    out = jax.block_until_ready(out)
    assert out.shape == (B, NUM_LABELS), out.shape

    # Tight check vs. precision-matched reference (bf16 weights, f32 accumulate).
    ref_m = reference_matched(x, w1, b1, w2, b2)
    assert jnp.allclose(out, ref_m, atol=2e-3, rtol=2e-3), "mismatch vs bf16 reference"

    # Loose check vs. pure-f32 module semantics (bf16 weight quantization only).
    ref = reference_f32(x, w1, b1, w2, b2)
    assert jnp.allclose(out, ref, atol=5e-2, rtol=5e-2), "mismatch vs f32 reference"

    print("KERNEL_OK")
</pallas_src>

<mosaic_0001>
module attributes {stable_mosaic.version = 11 : i64} {
  func.func @mlp_kernel(%arg0: i32, %arg1: memref<8x256xbf16, #tpu.memory_space<vmem>>, %arg2: memref<256x1024xbf16, #tpu.memory_space<vmem>>, %arg3: memref<1x1024xf32, #tpu.memory_space<vmem>>, %arg4: memref<1024x128xbf16, #tpu.memory_space<vmem>>, %arg5: memref<1x128xf32, #tpu.memory_space<vmem>>, %arg6: memref<8x128xf32, #tpu.memory_space<vmem>>, %arg7: memref<8x1024xf32, #tpu.memory_space<vmem>>) attributes {dimension_semantics = [#tpu.dimension_semantics<arbitrary>], iteration_bounds = array<i64: 3>, scalar_prefetch = 0 : i64, scratch_operands = 1 : i64, tpu.core_type = #tpu.core_type<tc>, window_params = [{transform_indices = @transform_0, window_bounds = array<i64: 8, 256>}, {transform_indices = @transform_1, window_bounds = array<i64: 256, 1024>}, {pipeline_mode = #tpu.pipeline_mode<synchronous>, transform_indices = @transform_2, window_bounds = array<i64: 1, 1024>}, {pipeline_mode = #tpu.pipeline_mode<synchronous>, transform_indices = @transform_3, window_bounds = array<i64: 1024, 128>}, {pipeline_mode = #tpu.pipeline_mode<synchronous>, transform_indices = @transform_4, window_bounds = array<i64: 1, 128>}, {pipeline_mode = #tpu.pipeline_mode<synchronous>, transform_indices = @transform_5, window_bounds = array<i64: 8, 128>}]} {
    %c0_i32 = arith.constant 0 : i32
    %0 = arith.cmpi eq, %arg0, %c0_i32 : i32
    %1 = arith.extui %0 : i1 to i32
    %c0_i32_0 = arith.constant 0 : i32
    %2 = arith.cmpi ne, %1, %c0_i32_0 : i32
    scf.if %2 {
      %cst_9 = arith.constant 0.000000e+00 : f32
      %12 = vector.broadcast %cst_9 : f32 to vector<8x1024xf32>
      %c0_10 = arith.constant 0 : index
      %c0_11 = arith.constant 0 : index
      %13 = vector.load %arg7[%c0_10, %c0_11] : memref<8x1024xf32, #tpu.memory_space<vmem>>, vector<8x1024xf32>
      tpu.vector_store %arg7[%c0_10, %c0_11], %12 {strides = array<i32>} : memref<8x1024xf32, #tpu.memory_space<vmem>>, vector<8x1024xf32>,
    } else {
    }
    %c0 = arith.constant 0 : index
    %c0_1 = arith.constant 0 : index
    %3 = vector.load %arg7[%c0, %c0_1] : memref<8x1024xf32, #tpu.memory_space<vmem>>, vector<8x1024xf32>
    %c0_2 = arith.constant 0 : index
    %c0_3 = arith.constant 0 : index
    %4 = vector.load %arg1[%c0_2, %c0_3] : memref<8x256xbf16, #tpu.memory_space<vmem>>, vector<8x256xbf16>
    %c0_4 = arith.constant 0 : index
    %c0_5 = arith.constant 0 : index
    %5 = vector.load %arg2[%c0_4, %c0_5] : memref<256x1024xbf16, #tpu.memory_space<vmem>>, vector<256x1024xbf16>
    %cst = arith.constant dense<0.000000e+00> : vector<8x1024xf32>
    %6 = tpu.matmul %4, %5, %cst {dimension_numbers = #tpu.dot_dimension_numbers<[1], [0], [0], [1], [0, 0, 1, 1], [], []>} : vector<8x256xbf16>, vector<256x1024xbf16>, vector<8x1024xf32> -> vector<8x1024xf32>
    %7 = arith.addf %3, %6 : vector<8x1024xf32>
    %c0_6 = arith.constant 0 : index
    %c0_7 = arith.constant 0 : index
    %8 = vector.load %arg7[%c0_6, %c0_7] : memref<8x1024xf32, #tpu.memory_space<vmem>>, vector<8x1024xf32>
    tpu.vector_store %arg7[%c0_6, %c0_7], %7 {strides = array<i32>} : memref<8x1024xf32, #tpu.memory_space<vmem>>, vector<8x1024xf32>,
    %c2_i32 = arith.constant 2 : i32
    %9 = arith.cmpi eq, %arg0, %c2_i32 : i32
    %10 = arith.extui %9 : i1 to i32
    %c0_i32_8 = arith.constant 0 : i32
    %11 = arith.cmpi ne, %10, %c0_i32_8 : i32
    scf.if %11 {
      %c0_9 = arith.constant 0 : index
      %c0_10 = arith.constant 0 : index
      %12 = vector.load %arg7[%c0_9, %c0_10] : memref<8x1024xf32, #tpu.memory_space<vmem>>, vector<8x1024xf32>
      %c0_11 = arith.constant 0 : index
      %c0_12 = arith.constant 0 : index
      %13 = vector.load %arg3[%c0_11, %c0_12] : memref<1x1024xf32, #tpu.memory_space<vmem>>, vector<1x1024xf32>
      %14 = vector.broadcast %13 : vector<1x1024xf32> to vector<8x1024xf32>
      %15 = arith.addf %12, %14 : vector<8x1024xf32>
      %cst_13 = arith.constant 0.000000e+00 : f32
      %16 = vector.broadcast %cst_13 : f32 to vector<8x1024xf32>
      %17 = arith.maximumf %15, %16 : vector<8x1024xf32>
      %18 = arith.truncf %17 : vector<8x1024xf32> to vector<8x1024xbf16>
      %c0_14 = arith.constant 0 : index
      %c0_15 = arith.constant 0 : index
      %19 = vector.load %arg4[%c0_14, %c0_15] : memref<1024x128xbf16, #tpu.memory_space<vmem>>, vector<1024x128xbf16>
      %cst_16 = arith.constant dense<0.000000e+00> : vector<8x128xf32>
      %20 = tpu.matmul %18, %19, %cst_16 {dimension_numbers = #tpu.dot_dimension_numbers<[1], [0], [0], [1], [0, 0, 1, 1], [], []>} : vector<8x1024xbf16>, vector<1024x128xbf16>, vector<8x128xf32> -> vector<8x128xf32>
      %c0_17 = arith.constant 0 : index
      %c0_18 = arith.constant 0 : index
      %21 = vector.load %arg5[%c0_17, %c0_18] : memref<1x128xf32, #tpu.memory_space<vmem>>, vector<1x128xf32>
      %22 = vector.broadcast %21 : vector<1x128xf32> to vector<8x128xf32>
      %23 = arith.addf %20, %22 : vector<8x128xf32>
      %c0_19 = arith.constant 0 : index
      %c0_20 = arith.constant 0 : index
      %24 = vector.load %arg6[%c0_19, %c0_20] : memref<8x128xf32, #tpu.memory_space<vmem>>, vector<8x128xf32>
      tpu.vector_store %arg6[%c0_19, %c0_20], %23 {strides = array<i32>} : memref<8x128xf32, #tpu.memory_space<vmem>>, vector<8x128xf32>,
    } else {
    }
    return
  }
  func.func @transform_0(%arg0: i32) -> (i32, i32) {
    %c0_i32 = arith.constant 0 : i32
    %c0_i32_0 = arith.constant 0 : i32
    return %c0_i32, %arg0 : i32, i32
  }
  func.func @transform_1(%arg0: i32) -> (i32, i32) {
    %c0_i32 = arith.constant 0 : i32
    %c0_i32_0 = arith.constant 0 : i32
    return %arg0, %c0_i32 : i32, i32
  }
  func.func @transform_2(%arg0: i32) -> (i32, i32) {
    %c0_i32 = arith.constant 0 : i32
    %c0_i32_0 = arith.constant 0 : i32
    %c0_i32_1 = arith.constant 0 : i32
    return %c0_i32, %c0_i32_0 : i32, i32
  }
  func.func @transform_3(%arg0: i32) -> (i32, i32) {
    %c0_i32 = arith.constant 0 : i32
    %c0_i32_0 = arith.constant 0 : i32
    %c0_i32_1 = arith.constant 0 : i32
    return %c0_i32, %c0_i32_0 : i32, i32
  }
  func.func @transform_4(%arg0: i32) -> (i32, i32) {
    %c0_i32 = arith.constant 0 : i32
    %c0_i32_0 = arith.constant 0 : i32
    %c0_i32_1 = arith.constant 0 : i32
    return %c0_i32, %c0_i32_0 : i32, i32
  }
  func.func @transform_5(%arg0: i32) -> (i32, i32) {
    %c0_i32 = arith.constant 0 : i32
    %c0_i32_0 = arith.constant 0 : i32
    %c0_i32_1 = arith.constant 0 : i32
    return %c0_i32, %c0_i32_0 : i32, i32
  }
}

</mosaic_0001>

<bundles_post_ra>
// kernel: tpu_custom_call.1
= control target key start
LH: loop header
LB: loop body
LE: loop exit
PB: predicated region body
PF: predicated region fallthrough
CT: control target
= control target key end

     0   :  { %10 = vsyncpa [#allocation4], 0  ;;  %s3320_s0 = inlined_call_operand.hbm [shape: bf16[8,768], index: 0, kind: input, shape index: {}]   ;;  %s3321_s1 = inlined_call_operand.hbm [shape: bf16[768,1024], index: 1, kind: input, shape index: {}]   ;;  %s3322_s2 = inlined_call_operand.hbm [shape: f32[1,1024], index: 2, kind: input, shape index: {}]   ;;  %s3323_s3 = inlined_call_operand.hbm [shape: bf16[1024,128], index: 3, kind: input, shape index: {}]   ;;  %s3324_s4 = inlined_call_operand.hbm [shape: f32[1,128], index: 4, kind: input, shape index: {}]   ;;  %s3325_s5 = inlined_call_operand.hbm [shape: f32[8,128], index: 5, kind: output, shape index: {}]  }
   0x1   :  { %12 = vsyncpa [#allocation4 + $0x1], 0 }
   0x2   :  { %13 = vsyncpa [#allocation7], 0 }
   0x3   :  { %15 = vsyncpa [#allocation7 + $0x1], 0 }
   0x4   :  { %16 = vsyncpa [#allocation10], 0 }
   0x5   :  { %17 = vsyncpa [#allocation5], 0  ;;  %s2881_s18 = smov 0   ;;  %s2883_s19 = smov 0  }
   0x6   :  { %s2885_s20 = smov 0   ;;  %s2887_s21 = smov 0  }
   0x7 LB: > { %s2900_s22 = sadd.s32 4294967295, %s2838_s21   ;;  %p43_p0 = scmp.ne.s32.totalorder %s2830_s19, %s2826_s18  ;;  %s2838_s21 = sphi %s2887_s21, %s3344_s21   ;;  %s2834_s20 = sphi %s2885_s20, %s3343_s20   ;;  %s2830_s19 = sphi %s2883_s19, %s3342_s19   ;;  %s2826_s18 = sphi %s2881_s18, %s3341_s18  }
   0x8   : > { %p3326_p1 = scmp.eq.s32.totalorder %s2900_s22, 0  ;;  %p2155_p2 = scmp.ge.s32.totalorder %s2838_s21, 1 }
   0x9   : > { %p164_p3 = scmp.lt.s32.totalorder %s2838_s21, 4  ;;  %s2840_s25 = smov [#allocation8]  }
   0xa   : > { %p2909_p5 = por %p3326_p1, %p43_p0  ;;  %s177_s26 = sshll.u32 %s2840_s25, 4  ;;  %s178_s26 = int_to_ptr.vmem [resolvable:$true] %s177_s26 }
   0xb   : > { %p2913_p6 = pnand %p2155_p2, %p164_p3  ;;  %s2841_s27 = smov [#allocation9]  }
   0xc   : > { %s3329_s23 = scalar_select %p2909_p5, 1, 0 }
   0xd   : > { %s3330_s24 = scalar_select %p2913_p6, 1, 0 }
   0xe   : > { %p2485_p7 = pneg %p2913_p6  ;;  %s187_s28 = sshll.u32 %s2841_s27, 4  ;;  %s2925_s28 = int_to_ptr.vmem [resolvable:$true] %s187_s28 }
   0xf   : > { %s2842_s30 = smov [#allocation11]   ;;  %s2618_s9 = scalar_lea.hbm %s3322_s2, 128 }
  0x10   : > { %p2921_p8 = pnand %p2485_p7, %p3326_p1  ;;  %s2927_s6 = sshll.u32 %s2842_s30, 4  ;;  %s202_s6 = int_to_ptr.vmem [resolvable:$true] %s2927_s6 }
  0x11   : > { %p2619_p9 = scmp.ne.s32.totalorder %s3322_s2, %s2618_s9  ;;  %p2625_p13 = scmp.lt.u32.totalorder %s2618_s9, %s3322_s2 }
  0x12   : > { %p2937_p10 = pneg %p2921_p8 }
  0x14   : > { %p2621_p11 = pnand %p2937_p10, %p2619_p9 }
  0x16   : > { %p2622_p12 = pneg %p2621_p11 }
  0x18   : > { %p2627_p0 = pnand %p2625_p13, %p2622_p12 }
  0x1a   : > { %2630 = shalt.err (!%p2627_p0)
}
  0x1b   : > { %s2631_s15 = scalar_lea.vmem %s178_s26, 128  ;;  %p2639_p4 = scmp.lt.s32.totalorder %s178_s26, %s178_s26 }
  0x1c   : > { %p2632_p2 = scmp.ne.s32.totalorder %s178_s26, %s2631_s15  ;;  %p2640_p1 = scmp.lt.s32.totalorder %s2631_s15, %s2631_s15 }
  0x1e   : > { %p2634_p3 = pnand %p2632_p2, %p2937_p10  ;;  %p2641_p5 = por %p2640_p1, %p2639_p4 }
  0x20   : > { %p2635_p7 = pneg %p2634_p3 }
  0x22   : > { %p2642_p6 = pnand %p2641_p5, %p2635_p7 }
  0x24   : > { %2645 = shalt.err (!%p2642_p6)
}
  0x25   : > { %2488 = dma.hbm_to_vmem [thread:$0]  (!%p2921_p8), %s3322_s2, 128, %s178_s26, [#allocation7]  }
  0x26   : > { %s2646_s27 = scalar_lea.hbm %s3323_s3, 8192 }
  0x27   : > { %p2647_p9 = scmp.ne.s32.totalorder %s3323_s3, %s2646_s27  ;;  %p2653_p4 = scmp.lt.u32.totalorder %s2646_s27, %s3323_s3 }
  0x29   : > { %p2649_p11 = pnand %p2647_p9, %p2937_p10 }
  0x2b   : > { %p2650_p1 = pneg %p2649_p11 }
  0x2d   : > { %p2655_p5 = pnand %p2653_p4, %p2650_p1 }
  0x2f   : > { %2658 = shalt.err (!%p2655_p5)
}
  0x30   : > { %s2659_s26 = scalar_lea.vmem %s2925_s28, 8192  ;;  %p2667_p0 = scmp.lt.s32.totalorder %s2925_s28, %s2925_s28 }
  0x31   : > { %p2660_p6 = scmp.ne.s32.totalorder %s2925_s28, %s2659_s26  ;;  %p2668_p2 = scmp.lt.s32.totalorder %s2659_s26, %s2659_s26 }
  0x33   : > { %p2662_p12 = pnand %p2660_p6, %p2937_p10  ;;  %p2669_p3 = por %p2668_p2, %p2667_p0 }
  0x35   : > { %p2663_p13 = pneg %p2662_p12 }
  0x37   : > { %p2670_p7 = pnand %p2669_p3, %p2663_p13 }
  0x39   : > { %2673 = shalt.err (!%p2670_p7)
}
  0x3a   : > { %s2843_s10 = smov 64   ;;  %s2844_s11 = smov 4  }
  0x3b   : > { %2491 = dma.hbm_to_vmem [thread:$0]  (!%p2921_p8), %s3323_s3, 8192, %s2925_s28, [#allocation10], %s2843_s10, %s2843_s10, %s2844_s11  }
  0x3c   : > { %s2674_s17 = scalar_lea.hbm %s3324_s4, 16 }
  0x3d   : > { %p2675_p9 = scmp.ne.s32.totalorder %s3324_s4, %s2674_s17  ;;  %p2681_p4 = scmp.lt.u32.totalorder %s2674_s17, %s3324_s4 }
  0x3f   : > { %p2677_p11 = pnand %p2675_p9, %p2937_p10 }
  0x41   : > { %p2678_p1 = pneg %p2677_p11 }
  0x43   : > { %p2683_p5 = pnand %p2681_p4, %p2678_p1 }
  0x45   : > { %2686 = shalt.err (!%p2683_p5)
}
  0x46   : > { %s2687_s7 = scalar_lea.vmem %s202_s6, 16  ;;  %s2694_s28 = scalar_lea.vmem %s202_s6, 32 }
  0x47   : > { %p2688_p6 = scmp.ne.s32.totalorder %s202_s6, %s2687_s7  ;;  %p2695_p0 = scmp.lt.s32.totalorder %s202_s6, %s202_s6 }
  0x48   : > { %p2696_p2 = scmp.lt.s32.totalorder %s2694_s28, %s2687_s7 }
  0x49   : > { %p2690_p12 = pnand %p2688_p6, %p2937_p10 }
  0x4a   : > { %p2697_p3 = por %p2696_p2, %p2695_p0 }
  0x4b   : > { %p2691_p13 = pneg %p2690_p12 }
  0x4d   : > { %p2698_p7 = pnand %p2697_p3, %p2691_p13 }
  0x4f   : > { %2701 = shalt.err (!%p2698_p7)
}
  0x50   : > { %2494 = dma.hbm_to_vmem [thread:$0]  (!%p2921_p8), %s3324_s4, 16, %s202_s6, [#allocation10]  }
  0x51   : > { %s2996_s12 = sadd.s32 1, %s2838_s21   ;;  %s30_s10 = sadd.s32 1, %s2834_s20 }
  0x52   : > { %s27_s26 = ssub.s32 %s2838_s21, %s2996_s12  ;;  %p37_p9 = scmp.ne.s32.totalorder %s2834_s20, %s2830_s19 }
  0x53   : > { %p28_p10 = scmp.eq.s32.totalorder %s27_s26, 0  ;;  %p38_p11 = scmp.eq.s32.totalorder %s2838_s21, 0 }
  0x54   : > { %p2505_p1 = scmp.lt.s32.totalorder %s2838_s21, 3  ;;  %s3009_s11 = sand.u32 1, %s2834_s20  }
  0x55   : > { %s3006_s29 = scalar_select %p28_p10, %s2834_s20, %s30_s10  }
  0x56   : > { %p39_p4 = por %p38_p11, %p37_p9  ;;  %s2160_s13 = sshll.u32 %s3009_s11, 3 }
  0x57   : > { %s2374_s6 = sshll.u32 %s2838_s21, 7  ;;  %s216_s17 = scalar_lea.vmem [#allocation3], %s2160_s13 }
  0x58   : > { %s3016_s16 = scalar_lea.hbm %s3320_s0, %s2374_s6  ;;  %s224_s18 = sshll.u32 %s216_s17, 4  ;;  %s3018_s18 = int_to_ptr.vmem [resolvable:$true] %s224_s18 }
  0x59   : > { %p3020_p8 = pnand %p2505_p1, %p39_p4  ;;  %s2163_s27 = sshll.u32 %s3009_s11, 10 }
  0x5a   : > { %s231_s30 = sand.u32 1, %s2838_s21   ;;  %s213_s7 = scalar_lea.sflag [#allocation4], %s3009_s11 }
  0x5b   : > { %s2702_s28 = scalar_lea.hbm %s3016_s16, 128  ;;  %p2704_p6 = pneg %p3020_p8 }
  0x5c   : > { %p2703_p5 = scmp.ne.s32.totalorder %s3016_s16, %s2702_s28  ;;  %s2707_s26 = scalar_lea.hbm %s3320_s0, 384 }
  0x5d   : > { %p2708_p0 = scmp.lt.u32.totalorder %s3016_s16, %s3320_s0  ;;  %p2709_p2 = scmp.lt.u32.totalorder %s2707_s26, %s2702_s28 }
  0x5e   : > { %p2705_p12 = pnand %p2704_p6, %p2703_p5  ;;  %p2711_p7 = scmp.lt.u32.totalorder %s2702_s28, %s3016_s16 }
  0x5f   : > { %p2710_p3 = por %p2709_p2, %p2708_p0 }
  0x60   : > { %p2706_p13 = pneg %p2705_p12 }
  0x61   : > { %p2712_p10 = por %p2711_p7, %p2710_p3 }
  0x63   : > { %p2713_p9 = pnand %p2712_p10, %p2706_p13 }
  0x65   : > { %2716 = shalt.err (!%p2713_p9)
}
  0x66   : > { %s2717_s6 = scalar_lea.vmem %s3018_s18, 128  ;;  %s2845_s14 = smov [#allocation3]  }
  0x67   : > { %p2718_p11 = scmp.ne.s32.totalorder %s3018_s18, %s2717_s6  ;;  %s2722_s15 = sshll.u32 %s2845_s14, 4  ;;  %s2723_s15 = int_to_ptr.vmem [resolvable:$false] %s2722_s15 }
  0x68   : > { %s2724_s17 = scalar_lea.vmem %s2723_s15, 256  ;;  %p2725_p5 = scmp.lt.s32.totalorder %s3018_s18, %s2723_s15 }
  0x69   : > { %p2720_p1 = pnand %p2718_p11, %p2704_p6  ;;  %p2726_p12 = scmp.lt.s32.totalorder %s2724_s17, %s2717_s6 }
  0x6b   : > { %p2721_p4 = pneg %p2720_p1  ;;  %p2727_p0 = por %p2726_p12, %p2725_p5 }
  0x6d   : > { %p2728_p2 = pnand %p2727_p0, %p2721_p4 }
  0x6f   : > { %2731 = shalt.err (!%p2728_p2)
}
  0x70   : > { %2498 = dma.hbm_to_vmem [thread:$0]  (!%p3020_p8), %s3016_s16, 128, %s3018_s18, %s213_s7  }
  0x71   : > { %s235_s28 = scalar_lea.vmem [#allocation6], %s2163_s27  ;;  %s2376_s9 = sshll.u32 %s2838_s21, 14 }
  0x72   : > { %s243_s8 = sshll.u32 %s235_s28, 4  ;;  %s3060_s13 = scalar_lea.hbm %s3321_s1, %s2376_s9  ;;  %s3054_s8 = int_to_ptr.vmem [resolvable:$true] %s243_s8 }
  0x73   : > { %s3064_s6 = scalar_lea.sflag [#allocation7], %s231_s30  ;;  %s2732_s14 = scalar_lea.hbm %s3060_s13, 16384 }
  0x74   : > { %p2733_p13 = scmp.ne.s32.totalorder %s3060_s13, %s2732_s14  ;;  %s2737_s18 = scalar_lea.hbm %s3321_s1, 49152 }
  0x75   : > { %p2738_p10 = scmp.lt.u32.totalorder %s3060_s13, %s3321_s1  ;;  %p2739_p9 = scmp.lt.u32.totalorder %s2737_s18, %s2732_s14 }
  0x76   : > { %p2735_p3 = pnand %p2733_p13, %p2704_p6  ;;  %p2741_p1 = scmp.lt.u32.totalorder %s2732_s14, %s3060_s13 }
  0x77   : > { %p2740_p11 = por %p2739_p9, %p2738_p10 }
  0x78   : > { %p2736_p7 = pneg %p2735_p3 }
  0x79   : > { %p2742_p4 = por %p2741_p1, %p2740_p11 }
  0x7b   : > { %p2743_p5 = pnand %p2742_p4, %p2736_p7 }
  0x7d   : > { %2746 = shalt.err (!%p2743_p5)
}
  0x7e   : > { %s2747_s21 = scalar_lea.vmem %s3054_s8, 16384  ;;  %s2846_s30 = smov [#allocation6]  }
  0x7f   : > { %p2748_p12 = scmp.ne.s32.totalorder %s3054_s8, %s2747_s21  ;;  %s2752_s15 = sshll.u32 %s2846_s30, 4  ;;  %s2753_s15 = int_to_ptr.vmem [resolvable:$false] %s2752_s15 }
  0x80   : > { %s2754_s17 = scalar_lea.vmem %s2753_s15, 32768  ;;  %p2755_p13 = scmp.lt.s32.totalorder %s3054_s8, %s2753_s15 }
  0x81   : > { %p2750_p0 = pnand %p2748_p12, %p2704_p6  ;;  %p2756_p3 = scmp.lt.s32.totalorder %s2754_s17, %s2747_s21 }
  0x83   : > { %p2751_p2 = pneg %p2750_p0  ;;  %p2757_p10 = por %p2756_p3, %p2755_p13 }
  0x85   : > { %p2758_p9 = pnand %p2757_p10, %p2751_p2 }
  0x87   : > { %2761 = shalt.err (!%p2758_p9)
}
  0x88   : > { %s2847_s28 = smov 512   ;;  %s2848_s9 = smov 32  }
  0x89   : > { %2501 = dma.hbm_to_vmem [thread:$0]  (!%p3020_p8), %s3060_s13, 16384, %s3054_s8, %s3064_s6, %s2847_s28, %s2847_s28, %s2848_s9  }
  0x8a   : > { %p3334_p6 = scmp.ne.s32.totalorder %s3330_s24, 0 }
  0x8b   : > { %s257_s26 = sand.u32 (!%p3334_p6), 1, %s2830_s19   ;;  %p3335_p7 = scmp.ne.s32.totalorder (!%p3334_p6), %s3329_s23, 0 }
  0x8c   : > { %255 = sbr.rel (%p3334_p6) target bundleno = 794 (0x31a), region = 40  ;;  %s2168_s10 = sshll.u32 (!%p3334_p6), %s257_s26, 3 }
  0x8d   : > { %s258_s14 = scalar_lea.sflag (!%p3334_p6), [#allocation4], %s257_s26  ;;  %s3093_s11 = scalar_lea.vmem (!%p3334_p6), [#allocation3], %s2168_s10 }
  0x93   : > { %2805 = dma.done.wait (%p3335_p7), %s258_s14, 128  }
  0x94   : > { %2807 = vsyncadd (%p3335_p7), %s258_s14, 4294967168  ;;  %s266_s16 = sand.u32 1, %s2900_s22   ;;  %s2169_s25 = sshll.u32 %s257_s26, 10 }
  0x95   : > { %s267_s8 = scalar_lea.sflag [#allocation7], %s266_s16  ;;  %s3100_s13 = scalar_lea.vmem [#allocation6], %s2169_s25 }
  0x96   : > { %2809 = dma.done.wait (%p3335_p7), %s267_s8, 16384  }
  0x97   : > { %2811 = vsyncadd (%p3335_p7), %s267_s8, 4294950912  ;;  %p3336_p8 = scmp.eq.s32.totalorder %s2900_s22, 0 }
  0x99   : > { %2813 = dma.done.wait (%p3336_p8), [#allocation7], 128   ;;  %p3337_p11 = pmov %p3336_p8 }
  0x9a   : > { %p3338_p1 = pmov %p3336_p8 }
  0x9b   : > { %2815 = vsyncadd (%p3337_p11), [#allocation7], 4294967168 }
  0x9c   : > { %2817 = dma.done.wait (%p3338_p1), [#allocation10], 8208   ;;  %p3339_p4 = pmov %p3338_p1 }
  0x9d   : > { %p3340_p5 = scmp.ne.s32.totalorder %s2900_s22, 0 }
  0x9e   : > { %2819 = vsyncadd (%p3339_p4), [#allocation10], 4294959088  ;;  %v2849_v0 = vmov (!%p3340_p5), 0.0  }
  0x9f   : > { %315 = sbr.rel (%p3340_p5) target bundleno = 166 (0xa6), region = 64  ;;  %316 = vst [vmem:[#allocation2] sm:$0xff] (!%p3340_p5), %v2849_v0  ;;  %317 = vst [vmem:[#allocation2 + $0x8] sm:$0xff] (!%p3340_p5), %v2849_v0 }
  0xa0   : > { %318 = vst [vmem:[#allocation2 + $0x10] sm:$0xff] (!%p3340_p5), %v2849_v0  ;;  %319 = vst [vmem:[#allocation2 + $0x18] sm:$0xff] (!%p3340_p5), %v2849_v0 }
  0xa1   : > { %320 = vst [vmem:[#allocation2 + $0x20] sm:$0xff] (!%p3340_p5), %v2849_v0  ;;  %321 = vst [vmem:[#allocation2 + $0x28] sm:$0xff] (!%p3340_p5), %v2849_v0 }
  0xa2   : > { %322 = vst [vmem:[#allocation2 + $0x30] sm:$0xff] (!%p3340_p5), %v2849_v0  ;;  %323 = vst [vmem:[#allocation2 + $0x38] sm:$0xff] (!%p3340_p5), %v2849_v0 }
  0xa6 PF: > { %v333_v1 = vld [vmem:[%s3100_s13] sm:$0xff]  ;;  %v334_v3 = vld [vmem:[%s3100_s13 + $0x8] sm:$0xff]  ;;  %v3145_v54 = vld [vmem:[%s3093_s11] sm:$0xff]  ;;  %p2304_p12 = scmp.ne.s32.totalorder %s2900_s22, 2 }
  0xa7   : > { %v337_v2 = vld [vmem:[%s3100_s13 + $0x20] sm:$0xff]  ;;  %v338_v5 = vld [vmem:[%s3100_s13 + $0x28] sm:$0xff]  ;;  %v3151_v58 = vcombine.high %v3145_v54, %v3145_v54 }
  0xa8   : > { %v2177_v4 = vcombine.high %v333_v1, %v337_v2  ;;  %v2176_v6 = vcombine.low %v333_v1, %v337_v2  ;;  %v341_v7 = vld [vmem:[%s3100_s13 + $0x40] sm:$0xff]  ;;  %v2179_v9 = vcombine.high %v334_v3, %v338_v5  ;;  %v2178_v10 = vcombine.low %v334_v3, %v338_v5  ;;  %v342_v12 = vld [vmem:[%s3100_s13 + $0x48] sm:$0xff] }
  0xa9   : > { %v345_v8 = vld [vmem:[%s3100_s13 + $0x60] sm:$0xff]  ;;  %v346_v13 = vld [vmem:[%s3100_s13 + $0x68] sm:$0xff]  ;;  %1140 = vmatprep.mubr.bf16.mxu0 %v3151_v58  ;;  %1181 = vmatprep.mubr.bf16.mxu1 %v3151_v58 }
  0xaa   : > { %v2185_v11 = vcombine.high %v341_v7, %v345_v8  ;;  %v349_v14 = vld [vmem:[%s3100_s13 + $0x80] sm:$0xff]  ;;  %1108 = vmatprep.subr.bf16.mxu0 %v2177_v4  ;;  %v2187_v15 = vcombine.high %v342_v12, %v346_v13  ;;  %v350_v17 = vld [vmem:[%s3100_s13 + $0x88] sm:$0xff]  ;;  %1149 = vmatprep.subr.bf16.mxu1 %v2179_v9  ;;  %v2184_v19 = vcombine.low %v341_v7, %v345_v8 }
  0xab   : > { %v353_v16 = vld [vmem:[%s3100_s13 + $0xa0] sm:$0xff]  ;;  %v354_v18 = vld [vmem:[%s3100_s13 + $0xa8] sm:$0xff]  ;;  %1109 = vmatpush1.bf16.msra.mxu0 %v2176_v6  ;;  %1150 = vmatpush1.bf16.msra.mxu1 %v2178_v10  ;;  %v2186_v20 = vcombine.low %v342_v12, %v346_v13 }
  0xac   : > { %1110 = vmatprep.subr.bf16.mxu0 %v2185_v11  ;;  %v2193_v21 = vcombine.high %v349_v14, %v353_v16  ;;  %1151 = vmatprep.subr.bf16.mxu1 %v2187_v15  ;;  %v2195_v22 = vcombine.high %v350_v17, %v354_v18  ;;  %v357_v23 = vld [vmem:[%s3100_s13 + $0xc0] sm:$0xff]  ;;  %v358_v25 = vld [vmem:[%s3100_s13 + $0xc8] sm:$0xff]  ;;  %v2192_v27 = vcombine.low %v349_v14, %v353_v16 }
  0xad   : > { %v361_v24 = vld [vmem:[%s3100_s13 + $0xe0] sm:$0xff]  ;;  %v362_v26 = vld [vmem:[%s3100_s13 + $0xe8] sm:$0xff]  ;;  %v2194_v28 = vcombine.low %v350_v17, %v354_v18 }
  0xae   : > { %v2201_v29 = vcombine.high %v357_v23, %v361_v24  ;;  %v2203_v30 = vcombine.high %v358_v25, %v362_v26  ;;  %v365_v31 = vld [vmem:[%s3100_s13 + $0x100] sm:$0xff]  ;;  %v366_v33 = vld [vmem:[%s3100_s13 + $0x108] sm:$0xff]  ;;  %v2200_v35 = vcombine.low %v357_v23, %v361_v24  ;;  %v2202_v36 = vcombine.low %v358_v25, %v362_v26 }
  0xaf   : > { %1111 = vmatpush1.bf16.msra.mxu0 %v2184_v19  ;;  %1152 = vmatpush1.bf16.msra.mxu1 %v2186_v20  ;;  %v369_v32 = vld [vmem:[%s3100_s13 + $0x120] sm:$0xff]  ;;  %v370_v34 = vld [vmem:[%s3100_s13 + $0x128] sm:$0xff] }
  0xb0   : > { %1112 = vmatprep.subr.bf16.mxu0 %v2193_v21  ;;  %1153 = vmatprep.subr.bf16.mxu1 %v2195_v22  ;;  %v2209_v37 = vcombine.high %v365_v31, %v369_v32  ;;  %v2211_v38 = vcombine.high %v366_v33, %v370_v34  ;;  %v373_v39 = vld [vmem:[%s3100_s13 + $0x140] sm:$0xff]  ;;  %v374_v41 = vld [vmem:[%s3100_s13 + $0x148] sm:$0xff]  ;;  %v2208_v43 = vcombine.low %v365_v31, %v369_v32 }
  0xb1   : > { %v377_v40 = vld [vmem:[%s3100_s13 + $0x160] sm:$0xff]  ;;  %v378_v42 = vld [vmem:[%s3100_s13 + $0x168] sm:$0xff]  ;;  %v2210_v44 = vcombine.low %v366_v33, %v370_v34 }
  0xb2   : > { %v2217_v45 = vcombine.high %v373_v39, %v377_v40  ;;  %v2219_v46 = vcombine.high %v374_v41, %v378_v42  ;;  %v381_v47 = vld [vmem:[%s3100_s13 + $0x180] sm:$0xff]  ;;  %v382_v49 = vld [vmem:[%s3100_s13 + $0x188] sm:$0xff]  ;;  %v2216_v51 = vcombine.low %v373_v39, %v377_v40  ;;  %v2218_v52 = vcombine.low %v374_v41, %v378_v42 }
  0xb3   : > { %1113 = vmatpush1.bf16.msra.mxu0 %v2192_v27  ;;  %1154 = vmatpush1.bf16.msra.mxu1 %v2194_v28  ;;  %v385_v48 = vld [vmem:[%s3100_s13 + $0x1a0] sm:$0xff]  ;;  %v386_v50 = vld [vmem:[%s3100_s13 + $0x1a8] sm:$0xff] }
  0xb4   : > { %1114 = vmatprep.subr.bf16.mxu0 %v2201_v29  ;;  %1155 = vmatprep.subr.bf16.mxu1 %v2203_v30  ;;  %v2225_v53 = vcombine.high %v381_v47, %v385_v48  ;;  %v2227_v55 = vcombine.high %v382_v49, %v386_v50  ;;  %v389_v56 = vld [vmem:[%s3100_s13 + $0x1c0] sm:$0xff]  ;;  %v390_v59 = vld [vmem:[%s3100_s13 + $0x1c8] sm:$0xff]  ;;  %v2224_v61 = vcombine.low %v381_v47, %v385_v48 }
  0xb5   : > { %v393_v57 = vld [vmem:[%s3100_s13 + $0x1e0] sm:$0xff]  ;;  %v394_v60 = vld [vmem:[%s3100_s13 + $0x1e8] sm:$0xff]  ;;  %v2226_v62 = vcombine.low %v382_v49, %v386_v50 }
  0xb6   : > { %v2233_v63 = vcombine.high %v389_v56, %v393_v57  ;;  %v2235_v0 = vcombine.high %v390_v59, %v394_v60  ;;  %v397_v1 = vld [vmem:[%s3100_s13 + $0x200] sm:$0xff]  ;;  %v398_v3 = vld [vmem:[%s3100_s13 + $0x208] sm:$0xff]  ;;  %v2232_v5 = vcombine.low %v389_v56, %v393_v57  ;;  %v2234_v6 = vcombine.low %v390_v59, %v394_v60 }
  0xb7   : > { %1115 = vmatpush1.bf16.msra.mxu0 %v2200_v35  ;;  %1156 = vmatpush1.bf16.msra.mxu1 %v2202_v36  ;;  %v401_v2 = vld [vmem:[%s3100_s13 + $0x220] sm:$0xff]  ;;  %v402_v4 = vld [vmem:[%s3100_s13 + $0x228] sm:$0xff] }
  0xb8   : > { %1116 = vmatprep.subr.bf16.mxu0 %v2209_v37  ;;  %1157 = vmatprep.subr.bf16.mxu1 %v2211_v38  ;;  %v2241_v7 = vcombine.high %v397_v1, %v401_v2  ;;  %v2243_v8 = vcombine.high %v398_v3, %v402_v4  ;;  %v405_v9 = vld [vmem:[%s3100_s13 + $0x240] sm:$0xff]  ;;  %v406_v11 = vld [vmem:[%s3100_s13 + $0x248] sm:$0xff]  ;;  %v2240_v13 = vcombine.low %v397_v1, %v401_v2 }
  0xb9   : > { %v409_v10 = vld [vmem:[%s3100_s13 + $0x260] sm:$0xff]  ;;  %v410_v12 = vld [vmem:[%s3100_s13 + $0x268] sm:$0xff]  ;;  %v2242_v14 = vcombine.low %v398_v3, %v402_v4  ;;  %v335_v3 = vld [vmem:[%s3100_s13 + $0x10] sm:$0xff] }
  0xba   : > { %v2249_v15 = vcombine.high %v405_v9, %v409_v10  ;;  %v2251_v16 = vcombine.high %v406_v11, %v410_v12  ;;  %v413_v17 = vld [vmem:[%s3100_s13 + $0x280] sm:$0xff]  ;;  %v414_v19 = vld [vmem:[%s3100_s13 + $0x288] sm:$0xff]  ;;  %v2248_v21 = vcombine.low %v405_v9, %v409_v10  ;;  %v2250_v22 = vcombine.low %v406_v11, %v410_v12  ;;  %v339_v4 = vld [vmem:[%s3100_s13 + $0x30] sm:$0xff] }
  0xbb   : > { %1117 = vmatpush1.bf16.msra.mxu0 %v2208_v43  ;;  %1158 = vmatpush1.bf16.msra.mxu1 %v2210_v44  ;;  %v417_v18 = vld [vmem:[%s3100_s13 + $0x2a0] sm:$0xff]  ;;  %v418_v20 = vld [vmem:[%s3100_s13 + $0x2a8] sm:$0xff]  ;;  %v2181_v9 = vcombine.high %v335_v3, %v339_v4  ;;  %v343_v11 = vld [vmem:[%s3100_s13 + $0x50] sm:$0xff] }
  0xbc   : > { %1118 = vmatprep.subr.bf16.mxu0 %v2217_v45  ;;  %1159 = vmatprep.subr.bf16.mxu1 %v2219_v46  ;;  %v2257_v23 = vcombine.high %v413_v17, %v417_v18  ;;  %v2259_v24 = vcombine.high %v414_v19, %v418_v20  ;;  %v421_v25 = vld [vmem:[%s3100_s13 + $0x2c0] sm:$0xff]  ;;  %v422_v27 = vld [vmem:[%s3100_s13 + $0x2c8] sm:$0xff]  ;;  %v2256_v29 = vcombine.low %v413_v17, %v417_v18  ;;  %v347_v12 = vld [vmem:[%s3100_s13 + $0x70] sm:$0xff] }
  0xbd   : > { %v425_v26 = vld [vmem:[%s3100_s13 + $0x2e0] sm:$0xff]  ;;  %v426_v28 = vld [vmem:[%s3100_s13 + $0x2e8] sm:$0xff]  ;;  %v2258_v30 = vcombine.low %v414_v19, %v418_v20  ;;  %v2189_v18 = vcombine.high %v343_v11, %v347_v12  ;;  %v351_v20 = vld [vmem:[%s3100_s13 + $0x90] sm:$0xff] }
  0xbe   : > { %v2265_v31 = vcombine.high %v421_v25, %v425_v26  ;;  %v2267_v32 = vcombine.high %v422_v27, %v426_v28  ;;  %v429_v33 = vld [vmem:[%s3100_s13 + $0x300] sm:$0xff]  ;;  %v430_v35 = vld [vmem:[%s3100_s13 + $0x308] sm:$0xff]  ;;  %v2264_v37 = vcombine.low %v421_v25, %v425_v26  ;;  %v2266_v38 = vcombine.low %v422_v27, %v426_v28  ;;  %v359_v27 = vld [vmem:[%s3100_s13 + $0xd0] sm:$0xff] }
  0xbf   : > { %1119 = vmatpush1.bf16.msra.mxu0 %v2216_v51  ;;  %1160 = vmatpush1.bf16.msra.mxu1 %v2218_v52  ;;  %v433_v34 = vld [vmem:[%s3100_s13 + $0x320] sm:$0xff]  ;;  %v434_v36 = vld [vmem:[%s3100_s13 + $0x328] sm:$0xff]  ;;  %v363_v28 = vld [vmem:[%s3100_s13 + $0xf0] sm:$0xff] }
  0xc0   : > { %1120 = vmatprep.subr.bf16.mxu0 %v2225_v53  ;;  %1161 = vmatprep.subr.bf16.mxu1 %v2227_v55  ;;  %v2273_v39 = vcombine.high %v429_v33, %v433_v34  ;;  %v2275_v40 = vcombine.high %v430_v35, %v434_v36  ;;  %v437_v41 = vld [vmem:[%s3100_s13 + $0x340] sm:$0xff]  ;;  %v438_v43 = vld [vmem:[%s3100_s13 + $0x348] sm:$0xff]  ;;  %v2272_v45 = vcombine.low %v429_v33, %v433_v34 }
  0xc1   : > { %v441_v42 = vld [vmem:[%s3100_s13 + $0x360] sm:$0xff]  ;;  %v442_v44 = vld [vmem:[%s3100_s13 + $0x368] sm:$0xff]  ;;  %v2274_v46 = vcombine.low %v430_v35, %v434_v36  ;;  %v2205_v33 = vcombine.high %v359_v27, %v363_v28  ;;  %v367_v35 = vld [vmem:[%s3100_s13 + $0x110] sm:$0xff] }
  0xc2   : > { %v2281_v47 = vcombine.high %v437_v41, %v441_v42  ;;  %v2283_v48 = vcombine.high %v438_v43, %v442_v44  ;;  %v445_v49 = vld [vmem:[%s3100_s13 + $0x380] sm:$0xff]  ;;  %v446_v51 = vld [vmem:[%s3100_s13 + $0x388] sm:$0xff]  ;;  %v2280_v53 = vcombine.low %v437_v41, %v441_v42  ;;  %v2282_v55 = vcombine.low %v438_v43, %v442_v44  ;;  %v371_v36 = vld [vmem:[%s3100_s13 + $0x130] sm:$0xff] }
  0xc3   : > { %1121 = vmatpush1.bf16.msra.mxu0 %v2224_v61  ;;  %1162 = vmatpush1.bf16.msra.mxu1 %v2226_v62  ;;  %v449_v50 = vld [vmem:[%s3100_s13 + $0x3a0] sm:$0xff]  ;;  %v450_v52 = vld [vmem:[%s3100_s13 + $0x3a8] sm:$0xff]  ;;  %v375_v42 = vld [vmem:[%s3100_s13 + $0x150] sm:$0xff] }
  0xc4   : > { %1122 = vmatprep.subr.bf16.mxu0 %v2233_v63  ;;  %1163 = vmatprep.subr.bf16.mxu1 %v2235_v0  ;;  %v2289_v56 = vcombine.high %v445_v49, %v449_v50  ;;  %v2291_v57 = vcombine.high %v446_v51, %v450_v52  ;;  %v453_v59 = vld [vmem:[%s3100_s13 + $0x3c0] sm:$0xff]  ;;  %v454_v61 = vld [vmem:[%s3100_s13 + $0x3c8] sm:$0xff]  ;;  %v2288_v63 = vcombine.low %v445_v49, %v449_v50  ;;  %v379_v43 = vld [vmem:[%s3100_s13 + $0x170] sm:$0xff] }
  0xc5   : > { %v457_v60 = vld [vmem:[%s3100_s13 + $0x3e0] sm:$0xff]  ;;  %v458_v62 = vld [vmem:[%s3100_s13 + $0x3e8] sm:$0xff]  ;;  %v2290_v0 = vcombine.low %v446_v51, %v450_v52  ;;  %v376_v44 = vld [vmem:[%s3100_s13 + $0x158] sm:$0xff] }
  0xc6   : > { %v2297_v1 = vcombine.high %v453_v59, %v457_v60  ;;  %v2299_v2 = vcombine.high %v454_v61, %v458_v62  ;;  %v383_v50 = vld [vmem:[%s3100_s13 + $0x190] sm:$0xff]  ;;  %v384_v52 = vld [vmem:[%s3100_s13 + $0x198] sm:$0xff] }
  0xc7   : > { %1123 = vmatpush1.bf16.msra.mxu0 %v2232_v5  ;;  %1164 = vmatpush1.bf16.msra.mxu1 %v2234_v6  ;;  %v336_v5 = vld [vmem:[%s3100_s13 + $0x18] sm:$0xff]  ;;  %v387_v51 = vld [vmem:[%s3100_s13 + $0x1b0] sm:$0xff] }
  0xc8   : > { %1124 = vmatprep.subr.bf16.mxu0 %v2241_v7  ;;  %1165 = vmatprep.subr.bf16.mxu1 %v2243_v8  ;;  %v340_v6 = vld [vmem:[%s3100_s13 + $0x38] sm:$0xff]  ;;  %v2296_v7 = vcombine.low %v453_v59, %v457_v60  ;;  %v2298_v8 = vcombine.low %v454_v61, %v458_v62  ;;  %v391_v60 = vld [vmem:[%s3100_s13 + $0x1d0] sm:$0xff] }
  0xc9   : > { %v2183_v10 = vcombine.high %v336_v5, %v340_v6  ;;  %v2182_v17 = vcombine.low %v336_v5, %v340_v6  ;;  %v395_v61 = vld [vmem:[%s3100_s13 + $0x1f0] sm:$0xff]  ;;  %v392_v62 = vld [vmem:[%s3100_s13 + $0x1d8] sm:$0xff] }
  0xca   : > { %v403_v5 = vld [vmem:[%s3100_s13 + $0x230] sm:$0xff]  ;;  %v400_v6 = vld [vmem:[%s3100_s13 + $0x218] sm:$0xff] }
  0xcb   : > { %1125 = vmatpush1.bf16.msra.mxu0 %v2240_v13  ;;  %1166 = vmatpush1.bf16.msra.mxu1 %v2242_v14  ;;  %v3197_v13 = vcombine.low %v3145_v54, %v3145_v54  ;;  %v344_v14 = vld [vmem:[%s3100_s13 + $0x58] sm:$0xff] }
  0xcc   : > { %1126 = vmatprep.subr.bf16.mxu0 %v2249_v15  ;;  %1167 = vmatprep.subr.bf16.mxu1 %v2251_v16  ;;  %v348_v15 = vld [vmem:[%s3100_s13 + $0x78] sm:$0xff]  ;;  %v2180_v16 = vcombine.low %v335_v3, %v339_v4  ;;  %v399_v4 = vld [vmem:[%s3100_s13 + $0x210] sm:$0xff] }
  0xcd   : > { %v2191_v19 = vcombine.high %v344_v14, %v348_v15  ;;  %v352_v54 = vld [vmem:[%s3100_s13 + $0x98] sm:$0xff] }
  0xcf   : > { %1127 = vmatpush1.bf16.msra.mxu0 %v2248_v21  ;;  %1168 = vmatpush1.bf16.msra.mxu1 %v2250_v22  ;;  %v355_v21 = vld [vmem:[%s3100_s13 + $0xb0] sm:$0xff]  ;;  %v356_v22 = vld [vmem:[%s3100_s13 + $0xb8] sm:$0xff] }
  0xd0   : > { %1128 = vmatprep.subr.bf16.mxu0 %v2257_v23  ;;  %1169 = vmatprep.subr.bf16.mxu1 %v2259_v24  ;;  %v2188_v23 = vcombine.low %v343_v11, %v347_v12  ;;  %v2190_v24 = vcombine.low %v344_v14, %v348_v15  ;;  %v2197_v25 = vcombine.high %v351_v20, %v355_v21  ;;  %v407_v12 = vld [vmem:[%s3100_s13 + $0x250] sm:$0xff]  ;;  %v408_v15 = vld [vmem:[%s3100_s13 + $0x258] sm:$0xff] }
  0xd1   : > { %v2199_v26 = vcombine.high %v352_v54, %v356_v22  ;;  %v411_v14 = vld [vmem:[%s3100_s13 + $0x270] sm:$0xff] }
  0xd3   : > { %1129 = vmatpush1.bf16.msra.mxu0 %v2256_v29  ;;  %1170 = vmatpush1.bf16.msra.mxu1 %v2258_v30  ;;  %v360_v29 = vld [vmem:[%s3100_s13 + $0xd8] sm:$0xff] }
  0xd4   : > { %1130 = vmatprep.subr.bf16.mxu0 %v2265_v31  ;;  %1171 = vmatprep.subr.bf16.mxu1 %v2267_v32  ;;  %v364_v30 = vld [vmem:[%s3100_s13 + $0xf8] sm:$0xff]  ;;  %v2196_v31 = vcombine.low %v351_v20, %v355_v21  ;;  %v2198_v32 = vcombine.low %v352_v54, %v356_v22  ;;  %v415_v21 = vld [vmem:[%s3100_s13 + $0x290] sm:$0xff] }
  0xd5   : > { %v2207_v34 = vcombine.high %v360_v29, %v364_v30  ;;  %v419_v54 = vld [vmem:[%s3100_s13 + $0x2b0] sm:$0xff]  ;;  %v416_v22 = vld [vmem:[%s3100_s13 + $0x298] sm:$0xff] }
  0xd7   : > { %1131 = vmatpush1.bf16.msra.mxu0 %v2264_v37  ;;  %1172 = vmatpush1.bf16.msra.mxu1 %v2266_v38  ;;  %v368_v37 = vld [vmem:[%s3100_s13 + $0x118] sm:$0xff] }
  0xd8   : > { %1132 = vmatprep.subr.bf16.mxu0 %v2273_v39  ;;  %1173 = vmatprep.subr.bf16.mxu1 %v2275_v40  ;;  %v372_v38 = vld [vmem:[%s3100_s13 + $0x138] sm:$0xff]  ;;  %v2204_v39 = vcombine.low %v359_v27, %v363_v28  ;;  %v2213_v40 = vcombine.high %v367_v35, %v371_v36  ;;  %v423_v28 = vld [vmem:[%s3100_s13 + $0x2d0] sm:$0xff] }
  0xd9   : > { %v2215_v41 = vcombine.high %v368_v37, %v372_v38 }
  0xdb   : > { %1133 = vmatpush1.bf16.msra.mxu0 %v2272_v45  ;;  %1174 = vmatpush1.bf16.msra.mxu1 %v2274_v46  ;;  %v380_v45 = vld [vmem:[%s3100_s13 + $0x178] sm:$0xff]  ;;  %v2212_v46 = vcombine.low %v367_v35, %v371_v36  ;;  %v431_v36 = vld [vmem:[%s3100_s13 + $0x310] sm:$0xff] }
  0xdc   : > { %1134 = vmatprep.subr.bf16.mxu0 %v2281_v47  ;;  %1175 = vmatprep.subr.bf16.mxu1 %v2283_v48  ;;  %v2214_v47 = vcombine.low %v368_v37, %v372_v38  ;;  %v2221_v48 = vcombine.high %v375_v42, %v379_v43  ;;  %v2223_v49 = vcombine.high %v376_v44, %v380_v45  ;;  %v435_v37 = vld [vmem:[%s3100_s13 + $0x330] sm:$0xff]  ;;  %v432_v38 = vld [vmem:[%s3100_s13 + $0x318] sm:$0xff] }
  0xdf   : > { %1135 = vmatpush1.bf16.msra.mxu0 %v2280_v53  ;;  %1176 = vmatpush1.bf16.msra.mxu1 %v2282_v55  ;;  %v388_v53 = vld [vmem:[%s3100_s13 + $0x1b8] sm:$0xff]  ;;  %v2220_v55 = vcombine.low %v375_v42, %v379_v43  ;;  %v439_v43 = vld [vmem:[%s3100_s13 + $0x350] sm:$0xff] }
  0xe0   : > { %1136 = vmatprep.subr.bf16.mxu0 %v2289_v56  ;;  %1177 = vmatprep.subr.bf16.mxu1 %v2291_v57  ;;  %v2222_v56 = vcombine.low %v376_v44, %v380_v45  ;;  %v2229_v57 = vcombine.high %v383_v50, %v387_v51  ;;  %v2231_v59 = vcombine.high %v384_v52, %v388_v53  ;;  %v443_v44 = vld [vmem:[%s3100_s13 + $0x370] sm:$0xff]  ;;  %v440_v45 = vld [vmem:[%s3100_s13 + $0x358] sm:$0xff] }
  0xe3   : > { %1137 = vmatpush1.bf16.msra.mxu0 %v2288_v63  ;;  %1178 = vmatpush1.bf16.msra.mxu1 %v2290_v0  ;;  %v396_v63 = vld [vmem:[%s3100_s13 + $0x1f8] sm:$0xff]  ;;  %v2228_v0 = vcombine.low %v383_v50, %v387_v51  ;;  %v447_v51 = vld [vmem:[%s3100_s13 + $0x390] sm:$0xff] }
  0xe4   : > { %1138 = vmatprep.subr.bf16.mxu0 %v2297_v1  ;;  %1179 = vmatprep.subr.bf16.mxu1 %v2299_v2  ;;  %v2230_v1 = vcombine.low %v384_v52, %v388_v53  ;;  %v2237_v2 = vcombine.high %v391_v60, %v395_v61  ;;  %v2239_v3 = vcombine.high %v392_v62, %v396_v63  ;;  %v451_v52 = vld [vmem:[%s3100_s13 + $0x3b0] sm:$0xff]  ;;  %v448_v53 = vld [vmem:[%s3100_s13 + $0x398] sm:$0xff] }
  0xe7   : > { %1139 = vmatpush1.bf16.msra.mxu0 %v2296_v7  ;;  %1180 = vmatpush1.bf16.msra.mxu1 %v2298_v8  ;;  %v404_v7 = vld [vmem:[%s3100_s13 + $0x238] sm:$0xff]  ;;  %v2236_v8 = vcombine.low %v391_v60, %v395_v61  ;;  %v455_v61 = vld [vmem:[%s3100_s13 + $0x3d0] sm:$0xff] }
  0xe8   : > { %1190 = vmatprep.subr.bf16.mxu0 %v2181_v9  ;;  %1231 = vmatprep.subr.bf16.mxu1 %v2183_v10  ;;  %v2238_v9 = vcombine.low %v392_v62, %v396_v63  ;;  %v2245_v10 = vcombine.high %v399_v4, %v403_v5  ;;  %v2247_v11 = vcombine.high %v400_v6, %v404_v7  ;;  %v459_v62 = vld [vmem:[%s3100_s13 + $0x3f0] sm:$0xff]  ;;  %v456_v63 = vld [vmem:[%s3100_s13 + $0x3d8] sm:$0xff] }
  0xea   : > { %1141 = vmatmul.mubr.bf16.vlgmr.msra.gmra.mrb[0].mxu0 %v3197_v13  ;;  %1182 = vmatmul.mubr.bf16.vlgmr.msra.gmra.mrb[0].mxu1 %v3197_v13 }
  0xeb   : > { %1191 = vmatpush1.bf16.msra.mxu0 %v2180_v16  ;;  %1232 = vmatpush1.bf16.msra.mxu1 %v2182_v17  ;;  %v412_v16 = vld [vmem:[%s3100_s13 + $0x278] sm:$0xff]  ;;  %v2244_v17 = vcombine.low %v399_v4, %v403_v5  ;;  %v2300_v5 = vcombine.low %v455_v61, %v459_v62 }
  0xec   : > { %1192 = vmatprep.subr.bf16.mxu0 %v2189_v18  ;;  %1233 = vmatprep.subr.bf16.mxu1 %v2191_v19  ;;  %v2246_v18 = vcombine.low %v400_v6, %v404_v7  ;;  %v2253_v19 = vcombine.high %v407_v12, %v411_v14  ;;  %v2255_v20 = vcombine.high %v408_v15, %v412_v16  ;;  %v324_v7 = vld [vmem:[#allocation2] sm:$0xff] }
  0xed   : > { %1222 = vmatprep.mubr.bf16.mxu0 %v3151_v58  ;;  %1263 = vmatprep.mubr.bf16.mxu1 %v3151_v58  ;;  %v2206_v58 = vcombine.low %v360_v29, %v364_v30  ;;  %v427_v29 = vld [vmem:[%s3100_s13 + $0x2f0] sm:$0xff]  ;;  %v424_v30 = vld [vmem:[%s3100_s13 + $0x2d8] sm:$0xff] }
  0xef   : > { %1193 = vmatpush1.bf16.msra.mxu0 %v2188_v23  ;;  %1234 = vmatpush1.bf16.msra.mxu1 %v2190_v24  ;;  %v420_v23 = vld [vmem:[%s3100_s13 + $0x2b8] sm:$0xff]  ;;  %v2252_v24 = vcombine.low %v407_v12, %v411_v14 }
  0xf0   : > { %1194 = vmatprep.subr.bf16.mxu0 %v2197_v25  ;;  %1235 = vmatprep.subr.bf16.mxu1 %v2199_v26  ;;  %v2254_v25 = vcombine.low %v408_v15, %v412_v16  ;;  %v2261_v26 = vcombine.high %v415_v21, %v419_v54  ;;  %v2263_v27 = vcombine.high %v416_v22, %v420_v23 }
  0xf3   : > { %1195 = vmatpush1.bf16.msra.mxu0 %v2196_v31  ;;  %1236 = vmatpush1.bf16.msra.mxu1 %v2198_v32  ;;  %v428_v31 = vld [vmem:[%s3100_s13 + $0x2f8] sm:$0xff]  ;;  %v2260_v32 = vcombine.low %v415_v21, %v419_v54 }
  0xf4   : > { %1196 = vmatprep.subr.bf16.mxu0 %v2205_v33  ;;  %1237 = vmatprep.subr.bf16.mxu1 %v2207_v34  ;;  %v2262_v33 = vcombine.low %v416_v22, %v420_v23  ;;  %v2269_v34 = vcombine.high %v423_v28, %v427_v29  ;;  %v2271_v35 = vcombine.high %v424_v30, %v428_v31  ;;  %v330_v23 = vld [vmem:[#allocation2 + $0x30] sm:$0xff] }
  0xf7   : > { %1197 = vmatpush1.bf16.msra.mxu0 %v2204_v39  ;;  %1238 = vmatpush1.bf16.msra.mxu1 %v2206_v58  ;;  %v436_v39 = vld [vmem:[%s3100_s13 + $0x338] sm:$0xff]  ;;  %v2268_v58 = vcombine.low %v423_v28, %v427_v29 }
  0xf8   : > { %1198 = vmatprep.subr.bf16.mxu0 %v2213_v40  ;;  %1239 = vmatprep.subr.bf16.mxu1 %v2215_v41  ;;  %v2270_v40 = vcombine.low %v424_v30, %v428_v31  ;;  %v2277_v41 = vcombine.high %v431_v36, %v435_v37  ;;  %v2279_v42 = vcombine.high %v432_v38, %v436_v39 }
  0xfb   : > { %1199 = vmatpush1.bf16.msra.mxu0 %v2212_v46  ;;  %1240 = vmatpush1.bf16.msra.mxu1 %v2214_v47  ;;  %v444_v46 = vld [vmem:[%s3100_s13 + $0x378] sm:$0xff]  ;;  %v2276_v47 = vcombine.low %v431_v36, %v435_v37 }
  0xfc   : > { %1200 = vmatprep.subr.bf16.mxu0 %v2221_v48  ;;  %1241 = vmatprep.subr.bf16.mxu1 %v2223_v49  ;;  %v2278_v48 = vcombine.low %v432_v38, %v436_v39  ;;  %v2285_v49 = vcombine.high %v439_v43, %v443_v44  ;;  %v2287_v50 = vcombine.high %v440_v45, %v444_v46  ;;  %v2554_v38 = vld [vmem:[#allocation9 + $0x40] sm:$0xff] (!%p2304_p12)  }
  0xfd   : > { %v2555_v39 = vld [vmem:[#allocation9 + $0xc0] sm:$0xff] (!%p2304_p12)  }
  0xff   : > { %1201 = vmatpush1.bf16.msra.mxu0 %v2220_v55  ;;  %1242 = vmatpush1.bf16.msra.mxu1 %v2222_v56  ;;  %v452_v55 = vld [vmem:[%s3100_s13 + $0x3b8] sm:$0xff]  ;;  %v2284_v56 = vcombine.low %v439_v43, %v443_v44  ;;  %v2560_v43 = vld [vmem:[#allocation9 + $0x8] sm:$0xff] (!%p2304_p12)  }
 0x100   : > { %1202 = vmatprep.subr.bf16.mxu0 %v2229_v57  ;;  %1243 = vmatprep.subr.bf16.mxu1 %v2231_v59  ;;  %v2286_v57 = vcombine.low %v440_v45, %v444_v46  ;;  %v2293_v59 = vcombine.high %v447_v51, %v451_v52  ;;  %v2295_v60 = vcombine.high %v448_v53, %v452_v55  ;;  %v2561_v44 = vld [vmem:[#allocation9 + $0x88] sm:$0xff] (!%p2304_p12)   ;;  %v2562_v45 = vld [vmem:[#allocation9 + $0x50] sm:$0xff] (!%p2304_p12)  }
 0x101   : > { %v2563_v46 = vld [vmem:[#allocation9 + $0xd0] sm:$0xff] (!%p2304_p12)  }
 0x103   : > { %1203 = vmatpush1.bf16.msra.mxu0 %v2228_v0  ;;  %1244 = vmatpush1.bf16.msra.mxu1 %v2230_v1  ;;  %v460_v0 = vld [vmem:[%s3100_s13 + $0x3f8] sm:$0xff]  ;;  %v2292_v1 = vcombine.low %v447_v51, %v451_v52  ;;  %v2568_v51 = vld [vmem:[#allocation9 + $0x18] sm:$0xff] (!%p2304_p12)  }
 0x104   : > { %1204 = vmatprep.subr.bf16.mxu0 %v2237_v2  ;;  %1245 = vmatprep.subr.bf16.mxu1 %v2239_v3  ;;  %v2294_v2 = vcombine.low %v448_v53, %v452_v55  ;;  %v2301_v3 = vcombine.high %v455_v61, %v459_v62  ;;  %v2303_v4 = vcombine.high %v456_v63, %v460_v0  ;;  %v2569_v52 = vld [vmem:[#allocation9 + $0x98] sm:$0xff] (!%p2304_p12)   ;;  %v2570_v53 = vld [vmem:[#allocation9 + $0x60] sm:$0xff] (!%p2304_p12)   ;;  %v2575_v61 = vld [vmem:[#allocation9 + $0xe8] sm:$0xff] (!%p2304_p12)  }
 0x105   : > { %v2302_v6 = vcombine.low %v456_v63, %v460_v0  ;;  %v2571_v55 = vld [vmem:[#allocation9 + $0xe0] sm:$0xff] (!%p2304_p12)   ;;  %v2576_v62 = vld [vmem:[#allocation9 + $0x28] sm:$0xff] (!%p2304_p12)  }
 0x106   : > { %v2577_v0 = vld [vmem:[#allocation9 + $0xa8] sm:$0xff] (!%p2304_p12)  }
 0x107   : > { %1205 = vmatpush1.bf16.msra.mxu0 %v2236_v8  ;;  %1246 = vmatpush1.bf16.msra.mxu1 %v2238_v9  ;;  %v326_v8 = vld [vmem:[#allocation2 + $0x10] sm:$0xff]  ;;  %v325_v9 = vld [vmem:[#allocation2 + $0x8] sm:$0xff] }
 0x108   : > { %1206 = vmatprep.subr.bf16.mxu0 %v2245_v10  ;;  %1247 = vmatprep.subr.bf16.mxu1 %v2247_v11  ;;  %v327_v11 = vld [vmem:[#allocation2 + $0x18] sm:$0xff] }
 0x10b   : > { %1207 = vmatpush1.bf16.msra.mxu0 %v2244_v17  ;;  %1248 = vmatpush1.bf16.msra.mxu1 %v2246_v18 }
 0x10c   : > { %1208 = vmatprep.subr.bf16.mxu0 %v2253_v19  ;;  %1249 = vmatprep.subr.bf16.mxu1 %v2255_v20 }
 0x10f   : > { %1209 = vmatpush1.bf16.msra.mxu0 %v2252_v24  ;;  %1250 = vmatpush1.bf16.msra.mxu1 %v2254_v25  ;;  %v329_v24 = vld [vmem:[#allocation2 + $0x28] sm:$0xff] }
 0x110   : > { %1210 = vmatprep.subr.bf16.mxu0 %v2261_v26  ;;  %1251 = vmatprep.subr.bf16.mxu1 %v2263_v27  ;;  %v331_v26 = vld [vmem:[#allocation2 + $0x38] sm:$0xff] }
 0x113   : > { %1211 = vmatpush1.bf16.msra.mxu0 %v2260_v32  ;;  %1252 = vmatpush1.bf16.msra.mxu1 %v2262_v33 }
 0x114   : > { %1212 = vmatprep.subr.bf16.mxu0 %v2269_v34  ;;  %1253 = vmatprep.subr.bf16.mxu1 %v2271_v35 }
 0x117   : > { %1213 = vmatpush1.bf16.msra.mxu0 %v2268_v58  ;;  %1254 = vmatpush1.bf16.msra.mxu1 %v2270_v40  ;;  %v2556_v58 = vld [vmem:[#allocation9] sm:$0xff] (!%p2304_p12)  }
 0x118   : > { %1214 = vmatprep.subr.bf16.mxu0 %v2277_v41  ;;  %1255 = vmatprep.subr.bf16.mxu1 %v2279_v42  ;;  %v2557_v40 = vld [vmem:[#allocation9 + $0x80] sm:$0xff] (!%p2304_p12)   ;;  %v2558_v41 = vld [vmem:[#allocation9 + $0x48] sm:$0xff] (!%p2304_p12)  }
 0x119   : > { %v2559_v42 = vld [vmem:[#allocation9 + $0xc8] sm:$0xff] (!%p2304_p12)  }
 0x11b   : > { %1215 = vmatpush1.bf16.msra.mxu0 %v2276_v47  ;;  %1256 = vmatpush1.bf16.msra.mxu1 %v2278_v48  ;;  %v2564_v47 = vld [vmem:[#allocation9 + $0x10] sm:$0xff] (!%p2304_p12)  }
 0x11c   : > { %1216 = vmatprep.subr.bf16.mxu0 %v2285_v49  ;;  %1257 = vmatprep.subr.bf16.mxu1 %v2287_v50  ;;  %v2565_v48 = vld [vmem:[#allocation9 + $0x90] sm:$0xff] (!%p2304_p12)   ;;  %v2566_v49 = vld [vmem:[#allocation9 + $0x58] sm:$0xff] (!%p2304_p12)  }
 0x11d   : > { %v2567_v50 = vld [vmem:[#allocation9 + $0xd8] sm:$0xff] (!%p2304_p12)  }
 0x11f   : > { %1217 = vmatpush1.bf16.msra.mxu0 %v2284_v56  ;;  %1258 = vmatpush1.bf16.msra.mxu1 %v2286_v57  ;;  %v2572_v56 = vld [vmem:[#allocation9 + $0x20] sm:$0xff] (!%p2304_p12)   ;;  %v1302_v57 = vlaneseq (!%p2304_p12) }
 0x120   : > { %1218 = vmatprep.subr.bf16.mxu0 %v2293_v59  ;;  %1259 = vmatprep.subr.bf16.mxu1 %v2295_v60  ;;  %v2573_v59 = vld [vmem:[#allocation9 + $0xa0] sm:$0xff] (!%p2304_p12)   ;;  %v2574_v60 = vld [vmem:[#allocation9 + $0x68] sm:$0xff] (!%p2304_p12)  }
 0x121   : > { %v3264_v63 = vshrl.u32 (!%p2304_p12), %v1302_v57, 7  ;;  %v2609_v57 = vld [vmem:[#allocation9 + $0x1a8] sm:$0xff] (!%p2304_p12)  }
 0x123   : > { %1219 = vmatpush1.bf16.msra.mxu0 %v2292_v1  ;;  %1260 = vmatpush1.bf16.msra.mxu1 %v2294_v2  ;;  %v2578_v1 = vld [vmem:[#allocation9 + $0x70] sm:$0xff] (!%p2304_p12)  }
 0x124   : > { %1220 = vmatprep.subr.bf16.mxu0 %v2301_v3  ;;  %1261 = vmatprep.subr.bf16.mxu1 %v2303_v4  ;;  %v2579_v2 = vld [vmem:[#allocation9 + $0xf0] sm:$0xff] (!%p2304_p12)   ;;  %v1308_v4 = vsub.s32 (!%p2304_p12), 1, %v3264_v63 }
 0x125   : > { %v2580_v3 = vld [vmem:[#allocation9 + $0x30] sm:$0xff] (!%p2304_p12)  }
 0x127   : > { %1221 = vmatpush1.bf16.msra.mxu0 %v2300_v5  ;;  %1262 = vmatpush1.bf16.msra.mxu1 %v2302_v6  ;;  %v2581_v5 = vld [vmem:[#allocation9 + $0xb0] sm:$0xff] (!%p2304_p12)   ;;  %v1316_v6 = vsub.s32 (!%p2304_p12), 3, %v3264_v63 }
 0x128   : > { %2377 = vmatprep.subr.bf16.mxu0 (!%p2304_p12), %v2554_v38  ;;  %2399 = vmatprep.subr.bf16.mxu1 (!%p2304_p12), %v2555_v39  ;;  %v2591_v38 = vld [vmem:[#allocation9 + $0x1c8] sm:$0xff] (!%p2304_p12)  }
 0x129   : > { %v2592_v39 = vld [vmem:[#allocation9 + $0x108] sm:$0xff] (!%p2304_p12)  }
 0x12a   : > { %1223 = vmatmul.mubr.bf16.vlgmr.msra.gmra.mrb[4].mxu0 %v3197_v13  ;;  %1264 = vmatmul.mubr.bf16.vlgmr.msra.gmra.mrb[4].mxu1 %v3197_v13  ;;  %v328_v13 = vld [vmem:[#allocation2 + $0x20] sm:$0xff] }
 0x12b   : > { %2378 = vmatpush3.bf16.msra.mxu0 (!%p2304_p12), %v2556_v58  ;;  %2400 = vmatpush3.bf16.msra.mxu1 (!%p2304_p12), %v2557_v40  ;;  %v2593_v58 = vld [vmem:[#allocation9 + $0x188] sm:$0xff] (!%p2304_p12)   ;;  %v2594_v40 = vld [vmem:[#allocation9 + $0x150] sm:$0xff] (!%p2304_p12)  }
 0x12c   : > { %2379 = vmatprep.subr.bf16.mxu0 (!%p2304_p12), %v2558_v41  ;;  %2401 = vmatprep.subr.bf16.mxu1 (!%p2304_p12), %v2559_v42  ;;  %v2595_v41 = vld [vmem:[#allocation9 + $0x1d0] sm:$0xff] (!%p2304_p12)  }
 0x12d   : > { %v2596_v42 = vld [vmem:[#allocation9 + $0x110] sm:$0xff] (!%p2304_p12)  }
 0x12f   : > { %2380 = vmatpush3.bf16.msra.mxu0 (!%p2304_p12), %v2560_v43  ;;  %2402 = vmatpush3.bf16.msra.mxu1 (!%p2304_p12), %v2561_v44  ;;  %v2597_v43 = vld [vmem:[#allocation9 + $0x190] sm:$0xff] (!%p2304_p12)   ;;  %v2598_v44 = vld [vmem:[#allocation9 + $0x158] sm:$0xff] (!%p2304_p12)  }
 0x130   : > { %2381 = vmatprep.subr.bf16.mxu0 (!%p2304_p12), %v2562_v45  ;;  %2403 = vmatprep.subr.bf16.mxu1 (!%p2304_p12), %v2563_v46  ;;  %v2599_v45 = vld [vmem:[#allocation9 + $0x1d8] sm:$0xff] (!%p2304_p12)  }
 0x131   : > { %v2600_v46 = vld [vmem:[#allocation9 + $0x118] sm:$0xff] (!%p2304_p12)  }
 0x133   : > { %2382 = vmatpush3.bf16.msra.mxu0 (!%p2304_p12), %v2564_v47  ;;  %2404 = vmatpush3.bf16.msra.mxu1 (!%p2304_p12), %v2565_v48  ;;  %v2601_v47 = vld [vmem:[#allocation9 + $0x198] sm:$0xff] (!%p2304_p12)   ;;  %v2602_v48 = vld [vmem:[#allocation9 + $0x160] sm:$0xff] (!%p2304_p12)  }
 0x134   : > { %2383 = vmatprep.subr.bf16.mxu0 (!%p2304_p12), %v2566_v49  ;;  %2405 = vmatprep.subr.bf16.mxu1 (!%p2304_p12), %v2567_v50  ;;  %v2603_v49 = vld [vmem:[#allocation9 + $0x1e0] sm:$0xff] (!%p2304_p12)  }
 0x135   : > { %v2604_v50 = vld [vmem:[#allocation9 + $0x120] sm:$0xff] (!%p2304_p12)  }
 0x137   : > { %2384 = vmatpush3.bf16.msra.mxu0 (!%p2304_p12), %v2568_v51  ;;  %2406 = vmatpush3.bf16.msra.mxu1 (!%p2304_p12), %v2569_v52  ;;  %v2605_v51 = vld [vmem:[#allocation9 + $0x1a0] sm:$0xff] (!%p2304_p12)   ;;  %v2606_v52 = vld [vmem:[#allocation9 + $0x168] sm:$0xff] (!%p2304_p12)  }
 0x138   : > { %2385 = vmatprep.subr.bf16.mxu0 (!%p2304_p12), %v2570_v53  ;;  %2407 = vmatprep.subr.bf16.mxu1 (!%p2304_p12), %v2571_v55  ;;  %v2607_v53 = vld [vmem:[#allocation9 + $0x1e8] sm:$0xff] (!%p2304_p12)  }
 0x139   : > { %v2608_v55 = vld [vmem:[#allocation9 + $0x128] sm:$0xff] (!%p2304_p12)  }
 0x13b   : > { %2386 = vmatpush3.bf16.msra.mxu0 (!%p2304_p12), %v2572_v56  ;;  %2408 = vmatpush3.bf16.msra.mxu1 (!%p2304_p12), %v2573_v59  ;;  %v1324_v56 = vsub.s32 (!%p2304_p12), 5, %v3264_v63  ;;  %v1332_v59 = vsub.s32 (!%p2304_p12), 7, %v3264_v63 }
 0x13c   : > { %2387 = vmatprep.subr.bf16.mxu0 (!%p2304_p12), %v2574_v60  ;;  %2409 = vmatprep.subr.bf16.mxu1 (!%p2304_p12), %v2575_v61  ;;  %v2610_v60 = vld [vmem:[#allocation9 + $0x170] sm:$0xff] (!%p2304_p12)   ;;  %v1320_v61 = vsub.s32 (!%p2304_p12), 4, %v3264_v63 }
 0x13f   : > { %2388 = vmatpush3.bf16.msra.mxu0 (!%p2304_p12), %v2576_v62  ;;  %2410 = vmatpush3.bf16.msra.mxu1 (!%p2304_p12), %v2577_v0  ;;  %v2611_v62 = vld [vmem:[#allocation9 + $0x1f0] sm:$0xff] (!%p2304_p12)   ;;  %v1328_v0 = vsub.s32 (!%p2304_p12), 6, %v3264_v63 }
 0x140   : > { %2389 = vmatprep.subr.bf16.mxu0 (!%p2304_p12), %v2578_v1  ;;  %2411 = vmatprep.subr.bf16.mxu1 (!%p2304_p12), %v2579_v2  ;;  %v2612_v1 = vld [vmem:[#allocation9 + $0x130] sm:$0xff] (!%p2304_p12)  }
 0x141   : > { %v2613_v2 = vld [vmem:[#allocation9 + $0x1b0] sm:$0xff] (!%p2304_p12)  }
 0x143   : > { %2390 = vmatpush3.bf16.msra.mxu0 (!%p2304_p12), %v2580_v3  ;;  %2412 = vmatpush3.bf16.msra.mxu1 (!%p2304_p12), %v2581_v5  ;;  %v2614_v3 = vld [vmem:[#allocation9 + $0x178] sm:$0xff] (!%p2304_p12)  }
 0x1bd   : > { %v1142_v10 = vpop.f32.mrb[0].mxu0  ;;  %v1183_v14 = vpop.f32.mrb[0].mxu1 }
 0x1be   : > { %v1272_v12 = vadd.f32 %v1142_v10, %v324_v7  ;;  %v1144_v15 = vpop.f32.mrb[1].mxu0  ;;  %v1274_v16 = vadd.f32 %v1183_v14, %v326_v8  ;;  %v1185_v18 = vpop.f32.mrb[1].mxu1  ;;  %v2582_v7 = vld [vmem:[#allocation9 + $0x78] sm:$0xff] (!%p2304_p12)   ;;  %v1304_v8 = vsub.s32 (!%p2304_p12), 0, %v3264_v63  ;;  %v1312_v10 = vsub.s32 (!%p2304_p12), 2, %v3264_v63 }
 0x1bf   : > { %v1273_v17 = vadd.f32 %v1144_v15, %v325_v9  ;;  %v1146_v19 = vpop.f32.mrb[2].mxu0  ;;  %v1275_v20 = vadd.f32 %v1185_v18, %v327_v11  ;;  %v1187_v21 = vpop.f32.mrb[2].mxu1  ;;  %v2583_v9 = vld [vmem:[#allocation9 + $0xf8] sm:$0xff] (!%p2304_p12)   ;;  %2391 = vmatprep.subr.bf16.mxu0 (!%p2304_p12), %v2582_v7 }
 0x1c0   : > { %1280 = vst [vmem:[#allocation2] sm:$0xff] %v1272_v12  ;;  %v1147_v54 = vpop.f32.mrb[3].mxu0  ;;  %1282 = vst [vmem:[#allocation2 + $0x10] sm:$0xff] %v1274_v16  ;;  %v1188_v22 = vpop.f32.mrb[3].mxu1  ;;  %v2584_v11 = vld [vmem:[#allocation9 + $0x38] sm:$0xff] (!%p2304_p12)   ;;  %2413 = vmatprep.subr.bf16.mxu1 (!%p2304_p12), %v2583_v9 }
 0x1c1   : > { %1281 = vst [vmem:[#allocation2 + $0x8] sm:$0xff] %v1273_v17  ;;  %1283 = vst [vmem:[#allocation2 + $0x18] sm:$0xff] %v1275_v20  ;;  %v2585_v12 = vld [vmem:[#allocation9 + $0xb8] sm:$0xff] (!%p2304_p12)   ;;  %2392 = vmatpush3.bf16.msra.mxu0 (!%p2304_p12), %v2584_v11  ;;  %v2586_v22 = vld [vmem:[#allocation9 + $0x140] sm:$0xff] (!%p2304_p12)  }
 0x1c2   : > { %v3270_v15 = vld [vmem:[#allocation8] sm:$0xff] (!%p2304_p12)  ;;  %2414 = vmatpush3.bf16.msra.mxu1 (!%p2304_p12), %v2585_v12  ;;  %2421 = vmatprep.subr.bf16.mxu0 (!%p2304_p12), %v2586_v22 }
 0x1c3   : > { %v1309_v17 = vrot.slane (!%p2304_p12), %v3270_v15, %v1308_v4  ;;  %v1317_v18 = vrot.slane (!%p2304_p12), %v3270_v15, %v1316_v6  ;;  %v1305_v20 = vrot.slane (!%p2304_p12), %v3270_v15, %v1304_v8  ;;  %v1313_v54 = vrot.slane (!%p2304_p12), %v3270_v15, %v1312_v10  ;;  %v2615_v6 = vld [vmem:[#allocation9 + $0x1f8] sm:$0xff] (!%p2304_p12)  }
 0x1c4   : > { %v1325_v4 = vrot.slane (!%p2304_p12), %v3270_v15, %v1324_v56  ;;  %v1333_v5 = vrot.slane (!%p2304_p12), %v3270_v15, %v1332_v59  ;;  %v1321_v7 = vrot.slane (!%p2304_p12), %v3270_v15, %v1320_v61  ;;  %v1329_v8 = vrot.slane (!%p2304_p12), %v3270_v15, %v1328_v0  ;;  %v2616_v9 = vld [vmem:[#allocation9 + $0x138] sm:$0xff] (!%p2304_p12)  }
 0x1c5   : > { %v2617_v63 = vld [vmem:[#allocation9 + $0x1b8] sm:$0xff] (!%p2304_p12)  }
 0x1c7   : > { %v1292_v19 = vld [vmem:[#allocation2] sm:$0xff] (!%p2304_p12)  ;;  %v1294_v21 = vld [vmem:[#allocation2 + $0x10] sm:$0xff] (!%p2304_p12) }
 0x1c8   : > { %v1293_v14 = vld [vmem:[#allocation2 + $0x8] sm:$0xff] (!%p2304_p12)  ;;  %v1295_v16 = vld [vmem:[#allocation2 + $0x18] sm:$0xff] (!%p2304_p12) }
 0x1fb   : > { %1291 = sbr.rel (%p2304_p12) target bundleno = 769 (0x301), region = 68 }
 0x1fd   : > { %v1224_v25 = vpop.f32.mrb[4].mxu0  ;;  %v1265_v28 = vpop.f32.mrb[4].mxu1 }
 0x1fe   : > { %v1276_v27 = vadd.f32 %v1224_v25, %v328_v13  ;;  %v1226_v29 = vpop.f32.mrb[5].mxu0  ;;  %v1278_v30 = vadd.f32 %v1265_v28, %v330_v23  ;;  %v1267_v32 = vpop.f32.mrb[5].mxu1  ;;  %v1343_v13 = vadd.f32 (!%p2304_p12), %v1309_v17, %v1293_v14  ;;  %v1345_v23 = vadd.f32 (!%p2304_p12), %v1317_v18, %v1295_v16 }
 0x1ff   : > { %v1277_v31 = vadd.f32 %v1226_v29, %v329_v24  ;;  %v1228_v33 = vpop.f32.mrb[6].mxu0  ;;  %v1279_v34 = vadd.f32 %v1267_v32, %v331_v26  ;;  %v1269_v35 = vpop.f32.mrb[6].mxu1  ;;  %v1342_v24 = vadd.f32 (!%p2304_p12), %v1305_v20, %v1292_v19  ;;  %v1344_v25 = vadd.f32 (!%p2304_p12), %v1313_v54, %v1294_v21  ;;  %v2587_v26 = vld [vmem:[#allocation9 + $0x1c0] sm:$0xff] (!%p2304_p12)  }
 0x200   : > { %1284 = vst [vmem:[#allocation2 + $0x20] sm:$0xff] %v1276_v27  ;;  %v1229_v36 = vpop.f32.mrb[7].mxu0  ;;  %1286 = vst [vmem:[#allocation2 + $0x30] sm:$0xff] %v1278_v30  ;;  %v1270_v37 = vpop.f32.mrb[7].mxu1  ;;  %v1351_v27 = vmax.f32 (!%p2304_p12), %v1343_v13, 0.0  ;;  %v1353_v28 = vmax.f32 (!%p2304_p12), %v1345_v23, 0.0  ;;  %2443 = vmatprep.subr.bf16.mxu1 (!%p2304_p12), %v2587_v26 }
 0x201   : > { %1285 = vst [vmem:[#allocation2 + $0x28] sm:$0xff] %v1277_v31  ;;  %1287 = vst [vmem:[#allocation2 + $0x38] sm:$0xff] %v1279_v34  ;;  %v1350_v29 = vmax.f32 (!%p2304_p12), %v1342_v24, 0.0  ;;  %v1352_v30 = vmax.f32 (!%p2304_p12), %v1344_v25, 0.0  ;;  %v2588_v31 = vld [vmem:[#allocation9 + $0x100] sm:$0xff] (!%p2304_p12)   ;;  %v2590_v37 = vld [vmem:[#allocation9 + $0x148] sm:$0xff] (!%p2304_p12)  }
 0x202   : > { %v2589_v32 = vld [vmem:[#allocation9 + $0x180] sm:$0xff]   ;;  %v1359_v33 = vpack.c.bf16 %v1351_v27, %v1351_v27  ;;  %v1361_v34 = vpack.c.bf16 %v1353_v28, %v1353_v28 }
 0x203   : > { %v1358_v35 = vpack.c.bf16 %v1350_v29, %v1350_v29  ;;  %v1360_v36 = vpack.c.bf16 %v1352_v30, %v1352_v30  ;;  %v2305_v27 = vld [vmem:[#allocation11] ss:$0 sm:$0xff] }
 0x204   : > { %1917 = vmatprep.mubr.bf16.mxu0 %v1359_v33  ;;  %1957 = vmatprep.mubr.bf16.mxu1 %v1361_v34 }
 0x205   : > { %1918 = vmatmul.mubr.bf16.vlgmr.msra.gmra.mrb[0].mxu0 %v1358_v35  ;;  %1958 = vmatmul.mubr.bf16.vlgmr.msra.gmra.mrb[0].mxu1 %v1360_v36 }
 0x206   : > { %2422 = vmatpush3.bf16.msra.mxu0 %v2588_v31  ;;  %2444 = vmatpush3.bf16.msra.mxu1 %v2589_v32 }
 0x207   : > { %2423 = vmatprep.subr.bf16.mxu0 %v2590_v37  ;;  %2445 = vmatprep.subr.bf16.mxu1 %v2591_v38  ;;  %v1296_v16 = vld [vmem:[#allocation2 + $0x20] sm:$0xff]  ;;  %v1298_v17 = vld [vmem:[#allocation2 + $0x30] sm:$0xff] }
 0x208   : > { %v1297_v10 = vld [vmem:[#allocation2 + $0x28] sm:$0xff]  ;;  %v1299_v11 = vld [vmem:[#allocation2 + $0x38] sm:$0xff]  ;;  %v1346_v18 = vadd.f32 %v1321_v7, %v1296_v16  ;;  %v1348_v19 = vadd.f32 %v1329_v8, %v1298_v17 }
 0x209   : > { %v1347_v12 = vadd.f32 %v1325_v4, %v1297_v10  ;;  %v1349_v14 = vadd.f32 %v1333_v5, %v1299_v11 }
 0x20a   : > { %2424 = vmatpush3.bf16.msra.mxu0 %v2592_v39  ;;  %2446 = vmatpush3.bf16.msra.mxu1 %v2593_v58  ;;  %v1354_v54 = vmax.f32 %v1346_v18, 0.0  ;;  %v1356_v22 = vmax.f32 %v1348_v19, 0.0 }
 0x20b   : > { %2425 = vmatprep.subr.bf16.mxu0 %v2594_v40  ;;  %2447 = vmatprep.subr.bf16.mxu1 %v2595_v41  ;;  %v1355_v20 = vmax.f32 %v1347_v12, 0.0  ;;  %v1357_v21 = vmax.f32 %v1349_v14, 0.0 }
 0x20c   : > { %v1362_v23 = vpack.c.bf16 %v1354_v54, %v1354_v54  ;;  %v1364_v24 = vpack.c.bf16 %v1356_v22, %v1356_v22 }
 0x20d   : > { %v1363_v15 = vpack.c.bf16 %v1355_v20, %v1355_v20  ;;  %v1365_v13 = vpack.c.bf16 %v1357_v21, %v1357_v21 }
 0x20e   : > { %2426 = vmatpush3.bf16.msra.mxu0 %v2596_v42  ;;  %2448 = vmatpush3.bf16.msra.mxu1 %v2597_v43 }
 0x20f   : > { %2427 = vmatprep.subr.bf16.mxu0 %v2598_v44  ;;  %2449 = vmatprep.subr.bf16.mxu1 %v2599_v45 }
 0x210   : > { %1997 = vmatprep.mubr.bf16.mxu0 %v1363_v15  ;;  %2037 = vmatprep.mubr.bf16.mxu1 %v1365_v13 }
 0x212   : > { %2428 = vmatpush3.bf16.msra.mxu0 %v2600_v46  ;;  %2450 = vmatpush3.bf16.msra.mxu1 %v2601_v47 }
 0x213   : > { %2429 = vmatprep.subr.bf16.mxu0 %v2602_v48  ;;  %2451 = vmatprep.subr.bf16.mxu1 %v2603_v49 }
 0x216   : > { %2430 = vmatpush3.bf16.msra.mxu0 %v2604_v50  ;;  %2452 = vmatpush3.bf16.msra.mxu1 %v2605_v51 }
 0x217   : > { %2431 = vmatprep.subr.bf16.mxu0 %v2606_v52  ;;  %2453 = vmatprep.subr.bf16.mxu1 %v2607_v53 }
 0x21a   : > { %2432 = vmatpush3.bf16.msra.mxu0 %v2608_v55  ;;  %2454 = vmatpush3.bf16.msra.mxu1 %v2609_v57 }
 0x21b   : > { %2433 = vmatprep.subr.bf16.mxu0 %v2610_v60  ;;  %2455 = vmatprep.subr.bf16.mxu1 %v2611_v62 }
 0x21e   : > { %2434 = vmatpush3.bf16.msra.mxu0 %v2612_v1  ;;  %2456 = vmatpush3.bf16.msra.mxu1 %v2613_v2 }
 0x21f   : > { %2435 = vmatprep.subr.bf16.mxu0 %v2614_v3  ;;  %2457 = vmatprep.subr.bf16.mxu1 %v2615_v6 }
 0x222   : > { %2436 = vmatpush3.bf16.msra.mxu0 %v2616_v9  ;;  %2458 = vmatpush3.bf16.msra.mxu1 %v2617_v63 }
 0x225   : > { %1998 = vmatmul.mubr.bf16.vlgmr.msra.gmra.mrb[4].mxu0 %v1362_v23  ;;  %2038 = vmatmul.mubr.bf16.vlgmr.msra.gmra.mrb[4].mxu1 %v1364_v24 }
 0x2d8   : > { %v2393_v25 = vpop.f32.mrb[0].mxu0  ;;  %v2415_v26 = vpop.f32.mrb[0].mxu1 }
 0x2d9   : > { %v2394_v28 = vpop.f32.mrb[1].mxu0  ;;  %v2416_v29 = vpop.f32.mrb[1].mxu1 }
 0x2da   : > { %v2395_v30 = vadd.f32 %v2394_v28, %v2393_v25  ;;  %v2417_v31 = vadd.f32 %v2416_v29, %v2415_v26  ;;  %v2396_v32 = vpop.f32.mrb[2].mxu0  ;;  %v2418_v33 = vpop.f32.mrb[2].mxu1 }
 0x2db   : > { %v2397_v34 = vpop.f32.mrb[3].mxu0  ;;  %v2419_v35 = vpop.f32.mrb[3].mxu1 }
 0x2dc   : > { %v1920_v36 = vadd.f32 %v2395_v30, %v2305_v27 }
 0x2de   : > { %v1960_v37 = vadd.f32 %v2417_v31, %v1920_v36 }
 0x2f8   : > { %v2437_v38 = vpop.f32.mrb[4].mxu0  ;;  %v2459_v39 = vpop.f32.mrb[4].mxu1 }
 0x2f9   : > { %v2438_v58 = vpop.f32.mrb[5].mxu0  ;;  %v2460_v40 = vpop.f32.mrb[5].mxu1 }
 0x2fa   : > { %v2439_v41 = vadd.f32 %v2438_v58, %v2437_v38  ;;  %v2461_v42 = vadd.f32 %v2460_v40, %v2459_v39  ;;  %v2440_v43 = vpop.f32.mrb[6].mxu0  ;;  %v2462_v44 = vpop.f32.mrb[6].mxu1 }
 0x2fb   : > { %v2441_v45 = vpop.f32.mrb[7].mxu0  ;;  %v2463_v46 = vpop.f32.mrb[7].mxu1 }
 0x2fc   : > { %v2000_v47 = vadd.f32 %v2439_v41, %v1960_v37 }
 0x2fe   : > { %v2040_v48 = vadd.f32 %v2461_v42, %v2000_v47 }
 0x300   : > { %2045 = vst [vmem:[#allocation12] sm:$0xff] %v2040_v48 }
 0x301 PF: > { %p2509_p0 = scmp.eq.s32.totalorder %s2900_s22, 2  ;;  %s2850_s23 = smov [#allocation12]  }
 0x302   : > { %s2053_s24 = sshll.u32 %s2850_s23, 4  ;;  %s2054_s24 = int_to_ptr.vmem [resolvable:$true] %s2053_s24 }
 0x303   : > { %s2762_s6 = scalar_lea.vmem %s2054_s24, 128  ;;  %p2769_p10 = scmp.lt.s32.totalorder %s2054_s24, %s2054_s24 }
 0x304   : > { %p2763_p2 = scmp.ne.s32.totalorder %s2054_s24, %s2762_s6  ;;  %p2770_p9 = scmp.lt.s32.totalorder %s2762_s6, %s2762_s6 }
 0x306   : > { %p2764_p13 = pnand %p2763_p2, %p2509_p0  ;;  %p2771_p6 = por %p2770_p9, %p2769_p10 }
 0x308   : > { %p2765_p3 = pneg %p2764_p13 }
 0x30a   : > { %p2772_p7 = pnand %p2771_p6, %p2765_p3 }
 0x30c   : > { %2775 = shalt.err (!%p2772_p7)
}
 0x30d   : > { %s2776_s7 = scalar_lea.hbm %s3325_s5, 128 }
 0x30e   : > { %p2777_p8 = scmp.ne.s32.totalorder %s3325_s5, %s2776_s7  ;;  %p2782_p4 = scmp.lt.u32.totalorder %s2776_s7, %s3325_s5 }
 0x310   : > { %p2778_p11 = pnand %p2777_p8, %p2509_p0 }
 0x312   : > { %p2779_p1 = pneg %p2778_p11 }
 0x314   : > { %p2784_p5 = pnand %p2782_p4, %p2779_p1 }
 0x316   : > { %2787 = shalt.err (!%p2784_p5)
}
 0x317   : > { %2482 = dma.vmem_to_hbm [thread:$0]  (%p2509_p0), %s2054_s24, 128, %s3325_s5, [#allocation5]  }
 0x318   : > { %2821 = dma.done.wait (%p2509_p0), [#allocation5], 128  }
 0x319   : > { %2823 = vsyncadd (%p2509_p0), [#allocation5], 4294967168 }
 0x31a PF: > { %p20_p12 = scmp.ge.s32.totalorder %s2996_s12, 5   ;;  %s3341_s18 = smov %s2830_s19 }
 0x31b   : > { %s3342_s19 = smov %s2834_s20  ;;  %s3343_s20 = smov %s3006_s29 }
 0x31c   : > { %s3344_s21 = smov %s2996_s12  ;;  %22 = sbr.rel (!%p20_p12) target bundleno = 7 (0x7), region = 110 }
 0x323   :  { %2066 = vsyncpa [#allocation4], 1 }
 0x324   :  { %2068 = vsyncpa [#allocation4 + $0x1], 1 }
 0x325   :  { %2069 = vsyncpa [#allocation7], 1 }
 0x326   :  { %2071 = vsyncpa [#allocation7 + $0x1], 1 }
 0x327   :  { %2072 = vsyncpa [#allocation10], 1 }
 0x328   :  { %2073 = vsyncpa [#allocation5], 1 }
 0x329   :  { %2075 = vsyncpa [#allocation5 + $0x1], 1 }

</bundles_post_ra>
